<compile_context>
chip_gen: v5e
topology: v5e:2x2
jax: 0.10.0
libtpu: 0.0.40
codegen_flags: <defaults>
</compile_context>

<pallas_src>
import jax
import jax.numpy as jnp
from jax.experimental import pallas as pl
from jax.experimental.pallas import tpu as pltpu

EPS = 1e-5   # BatchNorm eps
K = 9        # Conv1d kernel size


def sgcnn_kernel(x_ref, w1_ref, b1_ref, w2_ref, b2_ref, o_ref):
    # x:  (B, Cin, L)     NCW block of B samples (lane-dense on L)
    # w1: (C1m, K*Cin)    block-diagonal conv1 weight, BN folded, cols ordered k*Cin + cin
    # b1: (C1m, 1)        folded conv1 bias
    # w2: (C2, K*C1m)     conv2 weight, BN folded, cols ordered k*C1m + c1m
    # b2: (C2, 1)         folded conv2 bias
    # o:  (B, C2, L2)     NCW output block (lane-dense on L2)
    B, Cin, L = x_ref.shape
    L1 = L - (K - 1)
    L2 = L1 - (K - 1)

    w1 = w1_ref[...]
    b1 = b1_ref[...]
    w2 = w2_ref[...]
    b2 = b2_ref[...]

    # ---- conv1 (+ folded BN1) as ONE matmul, channel-major im2col (no transposes) ----
    # Per sample: stack K lane-shifted windows along the channel (sublane) axis,
    # then stack samples along lanes -> (K*Cin, B*L1).
    xbs = [x_ref[b].astype(jnp.float32) for b in range(B)]
    cols1 = jnp.concatenate(
        [jnp.concatenate([xb[:, k:k + L1] for k in range(K)], axis=0) for xb in xbs],
        axis=1)                                                        # (K*Cin, B*L1)
    h = jnp.dot(w1, cols1, preferred_element_type=jnp.float32) + b1
    h = jnp.maximum(h, 0.0)                                            # (C1m, B*L1)  ReLU before conv2

    # ---- conv2 (+ folded BN2) as ONE matmul (per-sample windows keep 'valid' bounds) ----
    cols2 = jnp.concatenate(
        [jnp.concatenate([h[:, b * L1 + k: b * L1 + k + L2] for k in range(K)], axis=0)
         for b in range(B)],
        axis=1)                                                        # (K*C1m, B*L2)
    z = jnp.dot(w2, cols2, preferred_element_type=jnp.float32) + b2
    z = jnp.maximum(z, 0.0)                                            # (C2, B*L2)  final ReLU

    # ---- store directly in NCW layout (lane-dense stores along L2, no transpose) ----
    for b in range(B):
        o_ref[b] = z[:, b * L2:(b + 1) * L2].astype(o_ref.dtype)


def pack_params(params, eps=EPS):
    """Fold eval-mode BatchNorm into the conv weights/biases, merge the 3 group convs
    into one block-diagonal conv, and lay weights out for channel-major im2col.
    Returns (w1p (C1m,K*Cin), b1p (C1m,1), w2p (C2,K*C1m), b2p (C2,1))."""
    (w1, b1, g1, be1, m1, v1, w2, b2, g2, be2, m2, v2) = params
    G, K_, Cs, C1 = w1.shape              # (3, K, 6, 18)
    C2 = w2.shape[-1]
    Cin = G * Cs                          # 18
    C1m = G * C1                          # 54

    # conv1: fold BN into weight/bias, then place each group on the block diagonal.
    s1 = g1 * jax.lax.rsqrt(v1 + eps)                                  # (G, C1)
    w1f = w1 * s1[:, None, None, :]                                    # (G, K, Cs, C1)
    b1f = (b1 - m1) * s1 + be1                                         # (G, C1)
    W1 = jnp.zeros((K_, Cin, C1m), jnp.float32)
    for g in range(G):
        W1 = W1.at[:, g * Cs:(g + 1) * Cs, g * C1:(g + 1) * C1].set(w1f[g])
    w1p = W1.reshape(K_ * Cin, C1m).T                                  # (C1m, K*Cin)
    b1p = b1f.reshape(C1m, 1)                                          # group-major channel order

    # conv2: fold group axis into the input-channel axis, fold BN into output channels.
    s2 = g2 * jax.lax.rsqrt(v2 + eps)                                  # (1, C2)
    W2 = jnp.transpose(w2, (1, 0, 2, 3)).reshape(K_, C1m, C2) * s2[None, :, :]
    w2p = W2.reshape(K_ * C1m, C2).T                                   # (C2, K*C1m)
    b2p = ((b2 - m2) * s2 + be2).reshape(C2, 1)
    return w1p, b1p, w2p, b2p


def sgcnn_forward(x_ncw, params, *, b_blk=None):
    """x_ncw: (N, 18, L) float32 (NCW) -> (N, C2, L - 16) float32 (NCW)."""
    w1p, b1p, w2p, b2p = pack_params(params)
    N, Cin, L = x_ncw.shape
    assert Cin % 3 == 0 and K * Cin == w1p.shape[1]
    assert L > 2 * (K - 1), "input too short for two valid k=9 convolutions"
    C1m = w1p.shape[0]
    C2 = w2p.shape[0]
    L1 = L - (K - 1)
    L2 = L1 - (K - 1)

    if b_blk is None:
        # Batch block: grow the matmul N dim (B_blk*L1) while keeping the grid
        # length >= 2 when N allows (feeds both TensorCores on v7x).
        cap = max(1, 4096 // max(L1, 1))
        if N > 1:
            cap = min(cap, max(1, N // 2))
        b_blk = max(d for d in range(1, N + 1) if N % d == 0 and d <= cap)
    assert N % b_blk == 0, (N, b_blk)
    grid = (N // b_blk,)

    # VMEM budget: double-buffered I/O blocks + weights + im2col intermediates.
    f32 = 4
    interm = b_blk * (L1 * (K * Cin + C1m) + L2 * (K * C1m + C2))
    need = (2 * b_blk * Cin * L * f32 + 2 * b_blk * C2 * L2 * f32
            + 2 * (w1p.size + b1p.size + w2p.size + b2p.size) * f32
            + 3 * interm * f32 + (4 << 20))
    vmem_limit = int(min(max(need, 32 << 20), 64 << 20))

    return pl.pallas_call(
        sgcnn_kernel,
        out_shape=jax.ShapeDtypeStruct((N, C2, L2), x_ncw.dtype),
        grid_spec=pltpu.PrefetchScalarGridSpec(
            num_scalar_prefetch=0,
            grid=grid,
            in_specs=[
                pl.BlockSpec((b_blk, Cin, L), lambda n: (n, 0, 0)),
                pl.BlockSpec(w1p.shape, lambda n: (0, 0)),
                pl.BlockSpec(b1p.shape, lambda n: (0, 0)),
                pl.BlockSpec(w2p.shape, lambda n: (0, 0)),
                pl.BlockSpec(b2p.shape, lambda n: (0, 0)),
            ],
            out_specs=pl.BlockSpec((b_blk, C2, L2), lambda n: (n, 0, 0)),
        ),
        compiler_params=pltpu.CompilerParams(
            dimension_semantics=("parallel",),
            vmem_limit_bytes=vmem_limit),
    )(x_ncw, w1p, b1p, w2p, b2p)


def sgcnn_reference(x_ncw, params):
    """Pure-JAX reference mirroring the PyTorch forward (NCW, cross-correlation)."""
    (w1, b1, g1, be1, m1, v1, w2, b2, g2, be2, m2, v2) = params
    Cs = x_ncw.shape[1] // 3
    dn = ("NCH", "OIH", "NCH")

    outs = []
    for i in range(3):
        wi = jnp.transpose(w1[i], (2, 1, 0))                 # (C1, Cs, K)
        xi = x_ncw[:, i * Cs:(i + 1) * Cs, :]
        y = jax.lax.conv_general_dilated(xi, wi, (1,), "VALID", dimension_numbers=dn)
        y = y + b1[i][None, :, None]
        y = (y - m1[i][None, :, None]) * (g1[i] / jnp.sqrt(v1[i] + EPS))[None, :, None] \
            + be1[i][None, :, None]
        outs.append(y)
    h = jnp.concatenate(outs, axis=1)                        # (N, 54, L-8)
    h = jnp.maximum(h, 0.0)

    C1, C2 = w2.shape[2], w2.shape[3]
    w2_pt = jnp.transpose(w2, (3, 0, 2, 1)).reshape(C2, 3 * C1, K)
    z = jax.lax.conv_general_dilated(h, w2_pt, (1,), "VALID", dimension_numbers=dn)
    z = z + b2[0][None, :, None]
    z = (z - m2[0][None, :, None]) * (g2[0] / jnp.sqrt(v2[0] + EPS))[None, :, None] \
        + be2[0][None, :, None]
    return jnp.maximum(z, 0.0)


if __name__ == "__main__":
    # activation = ReLU, norm = BatchNorm1d (eval mode), deterministic synthetic params.
    N, Cin, L = 4, 18, 32          # in_channels = 18 (must be 3 * split_size = 18)
    C1 = Cin                       # conv1 out channels
    Cs = Cin // 3                  # 6
    C2 = 32                        # `channels`

    keys = jax.random.split(jax.random.PRNGKey(0), 14)
    x   = jax.random.normal(keys[0], (N, Cin, L), jnp.float32)
    w1  = 0.2 * jax.random.normal(keys[1], (3, K, Cs, C1), jnp.float32)
    b1  = 0.1 * jax.random.normal(keys[2], (3, C1), jnp.float32)
    g1  = 1.0 + 0.1 * jax.random.normal(keys[3], (3, C1), jnp.float32)
    be1 = 0.1 * jax.random.normal(keys[4], (3, C1), jnp.float32)
    m1  = 0.1 * jax.random.normal(keys[5], (3, C1), jnp.float32)
    v1  = jax.random.uniform(keys[6], (3, C1), jnp.float32, 0.5, 1.5)
    w2  = 0.1 * jax.random.normal(keys[7], (3, K, C1, C2), jnp.float32)
    b2  = 0.1 * jax.random.normal(keys[8], (1, C2), jnp.float32)
    g2  = 1.0 + 0.1 * jax.random.normal(keys[9], (1, C2), jnp.float32)
    be2 = 0.1 * jax.random.normal(keys[10], (1, C2), jnp.float32)
    m2  = 0.1 * jax.random.normal(keys[11], (1, C2), jnp.float32)
    v2  = jax.random.uniform(keys[12], (1, C2), jnp.float32, 0.5, 1.5)
    params = (w1, b1, g1, be1, m1, v1, w2, b2, g2, be2, m2, v2)

    out = sgcnn_forward(x, params)          # grid=(2,), b_blk=2
    jax.block_until_ready(out)

    ref = sgcnn_reference(x, params)
    assert out.shape == (N, C2, L - 2 * (K - 1)), out.shape
    assert jnp.allclose(out, ref, atol=1e-4, rtol=1e-4), float(jnp.max(jnp.abs(out - ref)))
    print("KERNEL_OK")
</pallas_src>

<mosaic_0001>
module attributes {stable_mosaic.version = 11 : i64} {
  func.func @sgcnn_kernel(%arg0: i32, %arg1: memref<2x18x32xf32, #tpu.memory_space<vmem>>, %arg2: memref<54x162xf32, #tpu.memory_space<vmem>>, %arg3: memref<54x1xf32, #tpu.memory_space<vmem>>, %arg4: memref<32x486xf32, #tpu.memory_space<vmem>>, %arg5: memref<32x1xf32, #tpu.memory_space<vmem>>, %arg6: memref<2x32x16xf32, #tpu.memory_space<vmem>>) attributes {dimension_semantics = [#tpu.dimension_semantics<parallel>], iteration_bounds = array<i64: 2>, scalar_prefetch = 0 : i64, scratch_operands = 0 : i64, tpu.core_type = #tpu.core_type<tc>, window_params = [{transform_indices = @transform_0, window_bounds = array<i64: 2, 18, 32>}, {pipeline_mode = #tpu.pipeline_mode<synchronous>, transform_indices = @transform_1, window_bounds = array<i64: 54, 162>}, {pipeline_mode = #tpu.pipeline_mode<synchronous>, transform_indices = @transform_2, window_bounds = array<i64: 54, 1>}, {pipeline_mode = #tpu.pipeline_mode<synchronous>, transform_indices = @transform_3, window_bounds = array<i64: 32, 486>}, {pipeline_mode = #tpu.pipeline_mode<synchronous>, transform_indices = @transform_4, window_bounds = array<i64: 32, 1>}, {transform_indices = @transform_5, window_bounds = array<i64: 2, 32, 16>}]} {
    %c0 = arith.constant 0 : index
    %c0_0 = arith.constant 0 : index
    %0 = vector.load %arg2[%c0, %c0_0] : memref<54x162xf32, #tpu.memory_space<vmem>>, vector<54x162xf32>
    %c0_1 = arith.constant 0 : index
    %c0_2 = arith.constant 0 : index
    %1 = vector.load %arg3[%c0_1, %c0_2] : memref<54x1xf32, #tpu.memory_space<vmem>>, vector<54x1xf32>
    %c0_3 = arith.constant 0 : index
    %c0_4 = arith.constant 0 : index
    %2 = vector.load %arg4[%c0_3, %c0_4] : memref<32x486xf32, #tpu.memory_space<vmem>>, vector<32x486xf32>
    %c0_5 = arith.constant 0 : index
    %c0_6 = arith.constant 0 : index
    %3 = vector.load %arg5[%c0_5, %c0_6] : memref<32x1xf32, #tpu.memory_space<vmem>>, vector<32x1xf32>
    %c0_7 = arith.constant 0 : index
    %c0_8 = arith.constant 0 : index
    %c0_9 = arith.constant 0 : index
    %4 = vector.load %arg1[%c0_7, %c0_8, %c0_9] : memref<2x18x32xf32, #tpu.memory_space<vmem>>, vector<1x18x32xf32>
    %5 = vector.shape_cast %4 : vector<1x18x32xf32> to vector<18x32xf32>
    %c1 = arith.constant 1 : index
    %c0_10 = arith.constant 0 : index
    %c0_11 = arith.constant 0 : index
    %6 = vector.load %arg1[%c1, %c0_10, %c0_11] : memref<2x18x32xf32, #tpu.memory_space<vmem>>, vector<1x18x32xf32>
    %7 = vector.shape_cast %6 : vector<1x18x32xf32> to vector<18x32xf32>
    %8 = vector.extract_strided_slice %5 {offsets = [0, 0], sizes = [18, 24], strides = [1, 1]} : vector<18x32xf32> to vector<18x24xf32>
    %9 = vector.extract_strided_slice %5 {offsets = [0, 1], sizes = [18, 24], strides = [1, 1]} : vector<18x32xf32> to vector<18x24xf32>
    %10 = vector.extract_strided_slice %5 {offsets = [0, 2], sizes = [18, 24], strides = [1, 1]} : vector<18x32xf32> to vector<18x24xf32>
    %11 = vector.extract_strided_slice %5 {offsets = [0, 3], sizes = [18, 24], strides = [1, 1]} : vector<18x32xf32> to vector<18x24xf32>
    %12 = vector.extract_strided_slice %5 {offsets = [0, 4], sizes = [18, 24], strides = [1, 1]} : vector<18x32xf32> to vector<18x24xf32>
    %13 = vector.extract_strided_slice %5 {offsets = [0, 5], sizes = [18, 24], strides = [1, 1]} : vector<18x32xf32> to vector<18x24xf32>
    %14 = vector.extract_strided_slice %5 {offsets = [0, 6], sizes = [18, 24], strides = [1, 1]} : vector<18x32xf32> to vector<18x24xf32>
    %15 = vector.extract_strided_slice %5 {offsets = [0, 7], sizes = [18, 24], strides = [1, 1]} : vector<18x32xf32> to vector<18x24xf32>
    %16 = vector.extract_strided_slice %5 {offsets = [0, 8], sizes = [18, 24], strides = [1, 1]} : vector<18x32xf32> to vector<18x24xf32>
    %17 = tpu.concatenate %8, %9, %10, %11, %12, %13, %14, %15, %16 in 0 : vector<18x24xf32>, vector<18x24xf32>, vector<18x24xf32>, vector<18x24xf32>, vector<18x24xf32>, vector<18x24xf32>, vector<18x24xf32>, vector<18x24xf32>, vector<18x24xf32> -> vector<162x24xf32>
    %18 = vector.extract_strided_slice %7 {offsets = [0, 0], sizes = [18, 24], strides = [1, 1]} : vector<18x32xf32> to vector<18x24xf32>
    %19 = vector.extract_strided_slice %7 {offsets = [0, 1], sizes = [18, 24], strides = [1, 1]} : vector<18x32xf32> to vector<18x24xf32>
    %20 = vector.extract_strided_slice %7 {offsets = [0, 2], sizes = [18, 24], strides = [1, 1]} : vector<18x32xf32> to vector<18x24xf32>
    %21 = vector.extract_strided_slice %7 {offsets = [0, 3], sizes = [18, 24], strides = [1, 1]} : vector<18x32xf32> to vector<18x24xf32>
    %22 = vector.extract_strided_slice %7 {offsets = [0, 4], sizes = [18, 24], strides = [1, 1]} : vector<18x32xf32> to vector<18x24xf32>
    %23 = vector.extract_strided_slice %7 {offsets = [0, 5], sizes = [18, 24], strides = [1, 1]} : vector<18x32xf32> to vector<18x24xf32>
    %24 = vector.extract_strided_slice %7 {offsets = [0, 6], sizes = [18, 24], strides = [1, 1]} : vector<18x32xf32> to vector<18x24xf32>
    %25 = vector.extract_strided_slice %7 {offsets = [0, 7], sizes = [18, 24], strides = [1, 1]} : vector<18x32xf32> to vector<18x24xf32>
    %26 = vector.extract_strided_slice %7 {offsets = [0, 8], sizes = [18, 24], strides = [1, 1]} : vector<18x32xf32> to vector<18x24xf32>
    %27 = tpu.concatenate %18, %19, %20, %21, %22, %23, %24, %25, %26 in 0 : vector<18x24xf32>, vector<18x24xf32>, vector<18x24xf32>, vector<18x24xf32>, vector<18x24xf32>, vector<18x24xf32>, vector<18x24xf32>, vector<18x24xf32>, vector<18x24xf32> -> vector<162x24xf32>
    %28 = tpu.concatenate %17, %27 in 1 : vector<162x24xf32>, vector<162x24xf32> -> vector<162x48xf32>
    %cst = arith.constant dense<0.000000e+00> : vector<54x48xf32>
    %29 = tpu.matmul %0, %28, %cst {dimension_numbers = #tpu.dot_dimension_numbers<[1], [0], [0], [1], [0, 0, 1, 1], [], []>} : vector<54x162xf32>, vector<162x48xf32>, vector<54x48xf32> -> vector<54x48xf32>
    %30 = vector.broadcast %1 : vector<54x1xf32> to vector<54x48xf32>
    %31 = arith.addf %29, %30 : vector<54x48xf32>
    %cst_12 = arith.constant 0.000000e+00 : f32
    %32 = vector.broadcast %cst_12 : f32 to vector<54x48xf32>
    %33 = arith.maximumf %31, %32 : vector<54x48xf32>
    %34 = vector.extract_strided_slice %33 {offsets = [0, 0], sizes = [54, 16], strides = [1, 1]} : vector<54x48xf32> to vector<54x16xf32>
    %35 = vector.extract_strided_slice %33 {offsets = [0, 1], sizes = [54, 16], strides = [1, 1]} : vector<54x48xf32> to vector<54x16xf32>
    %36 = vector.extract_strided_slice %33 {offsets = [0, 2], sizes = [54, 16], strides = [1, 1]} : vector<54x48xf32> to vector<54x16xf32>
    %37 = vector.extract_strided_slice %33 {offsets = [0, 3], sizes = [54, 16], strides = [1, 1]} : vector<54x48xf32> to vector<54x16xf32>
    %38 = vector.extract_strided_slice %33 {offsets = [0, 4], sizes = [54, 16], strides = [1, 1]} : vector<54x48xf32> to vector<54x16xf32>
    %39 = vector.extract_strided_slice %33 {offsets = [0, 5], sizes = [54, 16], strides = [1, 1]} : vector<54x48xf32> to vector<54x16xf32>
    %40 = vector.extract_strided_slice %33 {offsets = [0, 6], sizes = [54, 16], strides = [1, 1]} : vector<54x48xf32> to vector<54x16xf32>
    %41 = vector.extract_strided_slice %33 {offsets = [0, 7], sizes = [54, 16], strides = [1, 1]} : vector<54x48xf32> to vector<54x16xf32>
    %42 = vector.extract_strided_slice %33 {offsets = [0, 8], sizes = [54, 16], strides = [1, 1]} : vector<54x48xf32> to vector<54x16xf32>
    %43 = tpu.concatenate %34, %35, %36, %37, %38, %39, %40, %41, %42 in 0 : vector<54x16xf32>, vector<54x16xf32>, vector<54x16xf32>, vector<54x16xf32>, vector<54x16xf32>, vector<54x16xf32>, vector<54x16xf32>, vector<54x16xf32>, vector<54x16xf32> -> vector<486x16xf32>
    %44 = vector.extract_strided_slice %33 {offsets = [0, 24], sizes = [54, 16], strides = [1, 1]} : vector<54x48xf32> to vector<54x16xf32>
    %45 = vector.extract_strided_slice %33 {offsets = [0, 25], sizes = [54, 16], strides = [1, 1]} : vector<54x48xf32> to vector<54x16xf32>
    %46 = vector.extract_strided_slice %33 {offsets = [0, 26], sizes = [54, 16], strides = [1, 1]} : vector<54x48xf32> to vector<54x16xf32>
    %47 = vector.extract_strided_slice %33 {offsets = [0, 27], sizes = [54, 16], strides = [1, 1]} : vector<54x48xf32> to vector<54x16xf32>
    %48 = vector.extract_strided_slice %33 {offsets = [0, 28], sizes = [54, 16], strides = [1, 1]} : vector<54x48xf32> to vector<54x16xf32>
    %49 = vector.extract_strided_slice %33 {offsets = [0, 29], sizes = [54, 16], strides = [1, 1]} : vector<54x48xf32> to vector<54x16xf32>
    %50 = vector.extract_strided_slice %33 {offsets = [0, 30], sizes = [54, 16], strides = [1, 1]} : vector<54x48xf32> to vector<54x16xf32>
    %51 = vector.extract_strided_slice %33 {offsets = [0, 31], sizes = [54, 16], strides = [1, 1]} : vector<54x48xf32> to vector<54x16xf32>
    %52 = vector.extract_strided_slice %33 {offsets = [0, 32], sizes = [54, 16], strides = [1, 1]} : vector<54x48xf32> to vector<54x16xf32>
    %53 = tpu.concatenate %44, %45, %46, %47, %48, %49, %50, %51, %52 in 0 : vector<54x16xf32>, vector<54x16xf32>, vector<54x16xf32>, vector<54x16xf32>, vector<54x16xf32>, vector<54x16xf32>, vector<54x16xf32>, vector<54x16xf32>, vector<54x16xf32> -> vector<486x16xf32>
    %54 = tpu.concatenate %43, %53 in 1 : vector<486x16xf32>, vector<486x16xf32> -> vector<486x32xf32>
    %cst_13 = arith.constant dense<0.000000e+00> : vector<32x32xf32>
    %55 = tpu.matmul %2, %54, %cst_13 {dimension_numbers = #tpu.dot_dimension_numbers<[1], [0], [0], [1], [0, 0, 1, 1], [], []>} : vector<32x486xf32>, vector<486x32xf32>, vector<32x32xf32> -> vector<32x32xf32>
    %56 = vector.broadcast %3 : vector<32x1xf32> to vector<32x32xf32>
    %57 = arith.addf %55, %56 : vector<32x32xf32>
    %cst_14 = arith.constant 0.000000e+00 : f32
    %58 = vector.broadcast %cst_14 : f32 to vector<32x32xf32>
    %59 = arith.maximumf %57, %58 : vector<32x32xf32>
    %60 = vector.extract_strided_slice %59 {offsets = [0, 0], sizes = [32, 16], strides = [1, 1]} : vector<32x32xf32> to vector<32x16xf32>
    %c0_15 = arith.constant 0 : index
    %c0_16 = arith.constant 0 : index
    %c0_17 = arith.constant 0 : index
    %61 = vector.load %arg6[%c0_15, %c0_16, %c0_17] : memref<2x32x16xf32, #tpu.memory_space<vmem>>, vector<1x32x16xf32>
    %62 = vector.shape_cast %61 : vector<1x32x16xf32> to vector<32x16xf32>
    %63 = vector.shape_cast %60 : vector<32x16xf32> to vector<1x32x16xf32>
    tpu.vector_store %arg6[%c0_15, %c0_16, %c0_17], %63 {strides = array<i32>} : memref<2x32x16xf32, #tpu.memory_space<vmem>>, vector<1x32x16xf32>,
    %64 = vector.extract_strided_slice %59 {offsets = [0, 16], sizes = [32, 16], strides = [1, 1]} : vector<32x32xf32> to vector<32x16xf32>
    %c1_18 = arith.constant 1 : index
    %c0_19 = arith.constant 0 : index
    %c0_20 = arith.constant 0 : index
    %65 = vector.load %arg6[%c1_18, %c0_19, %c0_20] : memref<2x32x16xf32, #tpu.memory_space<vmem>>, vector<1x32x16xf32>
    %66 = vector.shape_cast %65 : vector<1x32x16xf32> to vector<32x16xf32>
    %67 = vector.shape_cast %64 : vector<32x16xf32> to vector<1x32x16xf32>
    tpu.vector_store %arg6[%c1_18, %c0_19, %c0_20], %67 {strides = array<i32>} : memref<2x32x16xf32, #tpu.memory_space<vmem>>, vector<1x32x16xf32>,
    return
  }
  func.func @transform_0(%arg0: i32) -> (i32, i32, i32) {
    %c0_i32 = arith.constant 0 : i32
    %c0_i32_0 = arith.constant 0 : i32
    %c0_i32_1 = arith.constant 0 : i32
    return %arg0, %c0_i32, %c0_i32_0 : i32, i32, i32
  }
  func.func @transform_1(%arg0: i32) -> (i32, i32) {
    %c0_i32 = arith.constant 0 : i32
    %c0_i32_0 = arith.constant 0 : i32
    %c0_i32_1 = arith.constant 0 : i32
    return %c0_i32, %c0_i32_0 : i32, i32
  }
  func.func @transform_2(%arg0: i32) -> (i32, i32) {
    %c0_i32 = arith.constant 0 : i32
    %c0_i32_0 = arith.constant 0 : i32
    %c0_i32_1 = arith.constant 0 : i32
    return %c0_i32, %c0_i32_0 : i32, i32
  }
  func.func @transform_3(%arg0: i32) -> (i32, i32) {
    %c0_i32 = arith.constant 0 : i32
    %c0_i32_0 = arith.constant 0 : i32
    %c0_i32_1 = arith.constant 0 : i32
    return %c0_i32, %c0_i32_0 : i32, i32
  }
  func.func @transform_4(%arg0: i32) -> (i32, i32) {
    %c0_i32 = arith.constant 0 : i32
    %c0_i32_0 = arith.constant 0 : i32
    %c0_i32_1 = arith.constant 0 : i32
    return %c0_i32, %c0_i32_0 : i32, i32
  }
  func.func @transform_5(%arg0: i32) -> (i32, i32, i32) {
    %c0_i32 = arith.constant 0 : i32
    %c0_i32_0 = arith.constant 0 : i32
    %c0_i32_1 = arith.constant 0 : i32
    return %arg0, %c0_i32, %c0_i32_0 : i32, i32, i32
  }
}

</mosaic_0001>

<bundles_post_ra>
// kernel: tpu_custom_call.1
= control target key start
LH: loop header
LB: loop body
LE: loop exit
PB: predicated region body
PF: predicated region fallthrough
CT: control target
= control target key end

     0   :  { %10 = vsyncpa [#allocation3], 0  ;;  %s2043_s18 = smov 0   ;;  %s2917_s0 = inlined_call_operand.vmem [shape: f32[4,18,32], index: 0, kind: input, shape index: {}]   ;;  %s2918_s1 = inlined_call_operand.hbm [shape: f32[54,162], index: 1, kind: input, shape index: {}]   ;;  %s2919_s2 = inlined_call_operand.vmem [shape: f32[54,1], index: 2, kind: input, shape index: {}]   ;;  %s2920_s3 = inlined_call_operand.vmem [shape: f32[32,486], index: 3, kind: input, shape index: {}]   ;;  %s2921_s4 = inlined_call_operand.vmem [shape: f32[32,1], index: 4, kind: input, shape index: {}]   ;;  %s2922_s5 = inlined_call_operand.vmem [shape: f32[4,32,16], index: 5, kind: output, shape index: {}]  }
   0x1 LB: > { %s168_s21 = sshll.u32 %s2918_s1, 4  ;;  %s1430_s22 = sadd.s32 4294967295, %s1997_s18   ;;  %s1997_s18 = sphi %s2043_s18, %s16_s18   ;;  %s169_s21 = int_to_ptr.hbm [resolvable:$true] %s168_s21 }
   0x2   : > { %p1432_p0 = scmp.ge.s32.totalorder %s1997_s18, 1  ;;  %p157_p1 = scmp.lt.s32.totalorder %s1997_s18, 3 }
   0x3   : > { %p1490_p2 = scmp.eq.s32.totalorder %s1430_s22, 0  ;;  %s1999_s23 = smov [#allocation2]  }
   0x4   : > { %p158_p3 = pnand %p1432_p0, %p157_p1  ;;  %s170_s24 = sshll.u32 %s1999_s23, 4  ;;  %s171_s24 = int_to_ptr.vmem [resolvable:$true] %s170_s24 }
   0x5   : > { %s2000_s25 = smov 256   ;;  %s2001_s26 = smov 16  }
   0x6   : > { %p1486_p4 = pneg %p158_p3  ;;  %205 = sbr.rel (%p158_p3) target bundleno = 1162 (0x48a), region = 40 }
   0x8   : > { %p1487_p5 = pnand %p1490_p2, %p1486_p4 }
   0xa   : > { %1489 = dma.hbm_to_vmem [thread:$0]  (!%p1487_p5), %s169_s21, 1792, %s171_s24, [#allocation3], %s2000_s25, %s2000_s25, %s2001_s26  }
   0xb   : > { %1992 = dma.done.wait (%p1490_p2), [#allocation3], 1792  }
   0xc   : > { %1994 = vsyncadd (%p1490_p2), [#allocation3], 4294965504  ;;  %s1437_s27 = sshll.u32 %s1430_s22, 1  ;;  %vm331_vm0 = vcmask 1045504   ;;  %vm301_vm1 = vcmask 1041408   ;;  %s2002_s7 = smov 124  }
   0xd   : > { %p237_p6 = scmp.lt.s32.totalorder %s1437_s27, 3  ;;  %vm316_vm2 = vcmask 1043456   ;;  %s2003_s8 = smov 121   ;;  %vm549_vm3 = vcmask 195584   ;;  %vm606_vm4 = vcmask 277504   ;;  %vm1117_vm5 = vcmask 130048  }
   0xe   : > { %s2004_s9 = smov 127   ;;  %s2005_s10 = smov 122   ;;  %vm1199_vm6 = vcmask 834560  }
   0xf   : > { %s2962_s27 = smov (!%p237_p6, %s1437_s27), 3  ;;  %s2006_s11 = smov 123  }
  0x10   : > { %s1481_s28 = smul.u32 24, %s2962_s27  ;;  %s2007_s12 = smov 125  }
  0x11   : > { %s2008_s13 = smov 126   ;;  %s2009_s14 = smov 120  }
  0x12   : > { %s241_s6 = scalar_lea.vmem %s2917_s0, %s1481_s28  ;;  %s2010_s15 = smov 24  }
  0x13   : > { %v2060_v0 = vld [vmem:[%s241_s6 + $0x20] sm:$0xff]  ;;  %v2062_v1 = vld [vmem:[%s241_s6 + $0x28] sm:$0x3]  ;;  %v2064_v2 = vld [vmem:[%s241_s6 + $0x18] sm:$0xff]  ;;  %s1464_s25 = sshll.u32 %s2962_s27, 5  ;;  %s2012_s30 = smov 112  }
  0x14   : > { %v1514_v3 = vpack.i.bf16 %v2060_v0, %v2062_v1  ;;  %v426_v4 = vrot.slane %v2064_v2, 2  ;;  %v427_v5 = vrot.slane %v2060_v0, 2  ;;  %v429_v6 = vrot.slane %v2062_v1, 2  ;;  %v2071_v7 = vld [vmem:[%s241_s6] sm:$0xff]  ;;  %v2073_v8 = vld [vmem:[%s241_s6 + $0x8] sm:$0xff]  ;;  %s2896_s29 = scalar_lea.vmem %s2922_s5, %s1464_s25 }
  0x15   : > { %v302_v9 = vrot.slane %v2071_v7, 6  ;;  %v303_v10 = vrot.slane %v2073_v8, 6  ;;  %v400_v11 = vrot.slane %v2064_v2, 6  ;;  %v2078_v12 = vld [vmem:[%s241_s6 + $0x10] sm:$0x3]  ;;  %v401_v14 = vrot.slane %v2060_v0, 6 }
  0x16   : > { %1515 = vrot.lane.b32.xlu2 %v1514_v3, %s2002_s7  ;;  %v430_v13 = vsel %vm331_vm0, %v427_v5, %v429_v6  ;;  %v403_v15 = vrot.slane %v2062_v1, 6  ;;  %v318_v16 = vrot.slane %v2073_v8, 4  ;;  %v320_v20 = vrot.slane %v2078_v12, 4 }
  0x17   : > { %v1529_v17 = vpack.i.bf16 %v430_v13, %v426_v4  ;;  %v304_v18 = vsel %vm301_vm1, %v302_v9, %v303_v10  ;;  %v413_v21 = vrot.slane %v2064_v2, 4  ;;  %v414_v22 = vrot.slane %v2060_v0, 4 }
  0x18   : > { %v1519_v19 = vpack.i.bf16 %v304_v18, %v302_v9  ;;  %v416_v23 = vrot.slane %v2062_v1, 4  ;;  %v402_v24 = vsel %vm301_vm1, %v400_v11, %v401_v14  ;;  %v404_v25 = vsel %vm301_vm1, %v401_v14, %v403_v15 }
  0x19   : > { %1530 = vrot.lane.b32.xlu1 %v1529_v17, %s2003_s8  ;;  %v321_v26 = vsel %vm316_vm2, %v318_v16, %v320_v20  ;;  %v415_v28 = vsel %vm316_vm2, %v413_v21, %v414_v22  ;;  %v1534_v30 = vpack.i.bf16 %v402_v24, %v404_v25  ;;  %v428_v32 = vsel %vm331_vm0, %v426_v4, %v427_v5 }
  0x1a   : > { %1520 = vrot.lane.b32.xlu0 %v1519_v19, %s2004_s9  ;;  %v1539_v27 = vpack.i.bf16 %v321_v26, %v413_v21  ;;  %v417_v29 = vsel %vm316_vm2, %v414_v22, %v416_v23  ;;  %v305_v33 = vrot.slane %v2078_v12, 6  ;;  %v1554_v34 = vpack.i.bf16 %v428_v32, %v430_v13 }
  0x1b   : > { %v1524_v31 = vpack.i.bf16 %v415_v28, %v417_v29  ;;  %v1549_v36 = vpack.i.bf16 %v2078_v12, %v2064_v2  ;;  %v333_v38 = vrot.slane %v2073_v8, 2  ;;  %v335_v39 = vrot.slane %v2078_v12, 2 }
  0x1c   : > { %v306_v35 = vsel %vm301_vm1, %v303_v10, %v305_v33  ;;  %v332_v42 = vrot.slane %v2071_v7, 2  ;;  %v1599_v43 = vpack.i.bf16 %v302_v9, %v304_v18  ;;  %v1584_v45 = vpack.i.bf16 %v2064_v2, %v2060_v0 }
  0x1d   : > { %v1544_v37 = vpack.i.bf16 %v306_v35, %v400_v11  ;;  %v2111_v40 = vsel %vm331_vm0, %v333_v38, %v335_v39  ;;  %v317_v46 = vrot.slane %v2071_v7, 4  ;;  %v1604_v51 = vpack.i.bf16 %v2071_v7, %v2073_v8 }
  0x1e   : > { %1540 = vrot.lane.b32.xlu2 %v1539_v27, %s2005_s10  ;;  %v1564_v41 = vpack.i.bf16 %v2111_v40, %v426_v4  ;;  %v1589_v44 = vpack.i.bf16 %v332_v42, %v428_v32  ;;  %v2131_v49 = vsel %vm331_vm0, %v332_v42, %v333_v38 }
  0x1f   : > { %v319_v47 = vsel %vm316_vm2, %v317_v46, %v318_v16  ;;  %v1609_v50 = vpack.i.bf16 %v332_v42, %v2131_v49 }
  0x20   : > { %v1594_v48 = vpack.i.bf16 %v317_v46, %v319_v47 }
  0x21   : > { %1535 = vrot.lane.b32.xlu1 %v1534_v30, %s2006_s11 }
  0x22   : > { %1525 = vrot.lane.b32.xlu0 %v1524_v31, %s2005_s10 }
  0x26   : > { %1555 = vrot.lane.b32.xlu2 %v1554_v34, %s2007_s12 }
  0x29   : > { %1550 = vrot.lane.b32.xlu1 %v1549_v36, %s2002_s7 }
  0x2a   : > { %1545 = vrot.lane.b32.xlu0 %v1544_v37, %s2006_s11 }
  0x2e   : > { %1570 = vrot.lane.b32.xlu2 %v1534_v30, %s2004_s9 }
  0x31   : > { %1565 = vrot.lane.b32.xlu1 %v1564_v41, %s2007_s12 }
  0x32   : > { %1560 = vrot.lane.b32.xlu0 %v1524_v31, %s2008_s13 }
  0x36   : > { %1580 = vrot.lane.b32.xlu2 %v1544_v37, %s2004_s9 }
  0x39   : > { %472 = vrot.lane.b32.xlu1 %v2062_v1, %s2009_s14 }
  0x3a   : > { %1575 = vrot.lane.b32.xlu0 %v1539_v27, %s2008_s13 }
  0x3e   : > { %1600 = vrot.lane.b32.xlu2 %v1599_v43, %s2006_s11 }
  0x41   : > { %1590 = vrot.lane.b32.xlu1 %v1589_v44, %s2003_s8  ;;  %v1669_v44 = vpack.i.bf16 %v2131_v49, %v2111_v40 }
  0x42   : > { %1585 = vrot.lane.b32.xlu0 %v1584_v45, %s2009_s14 }
  0x49   : > { %1605 = vrot.lane.b32.xlu1 %v1604_v51, %s2002_s7 }
  0x4a   : > { %1595 = vrot.lane.b32.xlu0 %v1594_v48, %s2005_s10 }
  0x52   : > { %1610 = vrot.lane.b32.xlu0 %v1609_v50, %s2007_s12 }
  0x70   : > { %v1516_v52 = vpop.permute.xlu2 %1515 }
  0x71   : > { %v1517_v9 = vunpack.i.l.bf16 %v1516_v52  ;;  %v1518_v11 = vunpack.i.h.bf16 %v1516_v52 }
  0x78   : > { %v2142_v55 = vpop.permute.xlu2 %1540 }
  0x79   : > { %v1542_v56 = vunpack.i.l.bf16 %v2142_v55  ;;  %v1543_v52 = vunpack.i.h.bf16 %v2142_v55 }
  0x80   : > { %v1556_v63 = vpop.permute.xlu2 %1555 }
  0x81   : > { %v1557_v3 = vunpack.i.l.bf16 %v1556_v63  ;;  %v1558_v21 = vunpack.i.h.bf16 %v1556_v63 }
  0x88   : > { %v1571_v22 = vpop.permute.xlu2 %1570 }
  0x89   : > { %v1572_v29 = vunpack.i.l.bf16 %v1571_v22  ;;  %v1573_v37 = vunpack.i.h.bf16 %v1571_v22 }
  0x8b   : > { %v2138_v53 = vpop.permute.xlu1 %1530 }
  0x8c   : > { %v2140_v54 = vpop.permute.xlu0 %1520  ;;  %v1532_v17 = vunpack.i.l.bf16 %v2138_v53  ;;  %v1533_v50 = vunpack.i.h.bf16 %v2138_v53 }
  0x90   : > { %v2170_v33 = vpop.permute.xlu2 %1580 }
  0x91   : > { %v1582_v34 = vunpack.i.l.bf16 %v2170_v33 }
  0x93   : > { %v1536_v57 = vpop.permute.xlu1 %1535  ;;  %v474_v39 = vsel %vm301_vm1, %v2062_v1, %v1582_v34 }
  0x94   : > { %v1538_v58 = vunpack.i.h.bf16 %v1536_v57  ;;  %v1537_v59 = vunpack.i.l.bf16 %v1536_v57  ;;  %v1526_v60 = vpop.permute.xlu0 %1525  ;;  %v1639_v43 = vpack.i.bf16 %v474_v39, %v1573_v37 }
  0x95   : > { %v1527_v14 = vunpack.i.l.bf16 %v1526_v60  ;;  %v1528_v18 = vunpack.i.h.bf16 %v1526_v60 }
  0x96   : > { %v478_v61 = vsel %vm316_vm2, %v1537_v59, %v1542_v56 }
  0x97   : > { %v1634_v62 = vpack.i.bf16 %v1538_v58, %v478_v61  ;;  %v479_v19 = vsel %vm331_vm0, %v1527_v14, %v1532_v17 }
  0x98   : > { %v1624_v26 = vpack.i.bf16 %v1528_v18, %v479_v19  ;;  %v1601_v40 = vpop.permute.xlu2 %1600 }
  0x99   : > { %1635 = vrot.lane.b32.xlu1 %v1634_v62, %s2010_s15  ;;  %v1603_v18 = vunpack.i.h.bf16 %v1601_v40 }
  0x9b   : > { %v2147_v4 = vpop.permute.xlu1 %1550 }
  0x9c   : > { %v1552_v5 = vunpack.i.l.bf16 %v2147_v4  ;;  %v2150_v6 = vpop.permute.xlu0 %1545  ;;  %v1553_v17 = vunpack.i.h.bf16 %v2147_v4 }
  0x9d   : > { %v1547_v10 = vunpack.i.l.bf16 %v2150_v6 }
  0x9e   : > { %v1619_v13 = vpack.i.bf16 %v1557_v3, %v1552_v5  ;;  %v1548_v3 = vunpack.i.h.bf16 %v2150_v6 }
  0x9f   : > { %v477_v15 = vsel %vm301_vm1, %v1517_v9, %v1547_v10 }
  0xa0   : > { %1620 = vrot.lane.b32.xlu2 %v1619_v13, %s2010_s15  ;;  %v1614_v16 = vpack.i.bf16 %v1518_v11, %v477_v15  ;;  %v1602_v13 = vunpack.i.l.bf16 %v1601_v40 }
  0xa1   : > { %386 = vrot.lane.b32.xlu1 %v2078_v12, %s2009_s14 }
  0xa2   : > { %1615 = vrot.lane.b32.xlu0 %v1614_v16, %s2010_s15 }
  0xa3   : > { %v2160_v20 = vpop.permute.xlu1 %1565 }
  0xa4   : > { %v1567_v23 = vunpack.i.l.bf16 %v2160_v20  ;;  %v1561_v24 = vpop.permute.xlu0 %1560  ;;  %v1568_v34 = vunpack.i.h.bf16 %v2160_v20  ;;  %v267_v20 = vld [vmem:[%s2919_s2 + $0x18] sm:$0xff] }
  0xa5   : > { %v1562_v25 = vunpack.i.l.bf16 %v1561_v24  ;;  %v1563_v36 = vunpack.i.h.bf16 %v1561_v24 }
  0xa7   : > { %v476_v27 = vsel %vm331_vm0, %v1562_v25, %v1567_v23  ;;  %v394_v23 = vsel %vm301_vm1, %v1553_v17, %v1603_v18 }
  0xa8   : > { %1625 = vrot.lane.b32.xlu2 %v1624_v26, %s2010_s15  ;;  %v1644_v28 = vpack.i.bf16 %v476_v27, %v1558_v21 }
  0xaa   : > { %1645 = vrot.lane.b32.xlu1 %v1644_v28, %s2010_s15  ;;  %v2011_v28 = vmov 0  }
  0xab   : > { %v473_v30 = vpop.permute.xlu1 %472  ;;  %1680 = vset.pattern.permute.xlu1 %v2011_v28  ;;  %1679 = vset.pattern.permute.xlu0 %v2011_v28 }
  0xac   : > { %v2166_v31 = vpop.permute.xlu0 %1575  ;;  %526 = vrot.lane.b32.xlu0 %v473_v30, %s2010_s15  ;;  %1681 = vset.pattern.permute.xlu2 %v2011_v28  ;;  %v253_v28 = vld [vmem:[#allocation2 + $0x18] sm:$0xff] }
  0xad   : > { %v1577_v32 = vunpack.i.l.bf16 %v2166_v31 }
  0xaf   : > { %v475_v35 = vsel %vm316_vm2, %v1572_v29, %v1577_v32  ;;  %v265_v29 = vld [vmem:[%s2919_s2 + $0x8] sm:$0xff] }
  0xb0   : > { %1630 = vrot.lane.b32.xlu2 %v1594_v48, %s2008_s13  ;;  %v1659_v38 = vpack.i.bf16 %v475_v35, %v1563_v36 }
  0xb2   : > { %1650 = vrot.lane.b32.xlu1 %v1604_v51, %s2009_s14 }
  0xb3   : > { %v1591_v1 = vpop.permute.xlu1 %1590 }
  0xb4   : > { %v1586_v41 = vpop.permute.xlu0 %1585  ;;  %1660 = vrot.lane.b32.xlu0 %v1659_v38, %s2010_s15  ;;  %v1592_v48 = vunpack.i.l.bf16 %v1591_v1  ;;  %v1593_v49 = vunpack.i.h.bf16 %v1591_v1 }
  0xb5   : > { %v1588_v42 = vunpack.i.h.bf16 %v1586_v41  ;;  %v1587_v46 = vunpack.i.l.bf16 %v1586_v41 }
  0xb6   : > { %v1674_v51 = vpack.i.bf16 %v1592_v48, %v1533_v50  ;;  %v396_v61 = vsel %vm331_vm0, %v1543_v52, %v1593_v49 }
  0xb7   : > { %v1664_v45 = vpack.i.bf16 %v2064_v2, %v1588_v42  ;;  %v1654_v47 = vpack.i.bf16 %v2060_v0, %v1587_v46 }
  0xb8   : > { %1640 = vrot.lane.b32.xlu2 %v1639_v43, %s2010_s15  ;;  %v1578_v43 = vunpack.i.h.bf16 %v2166_v31 }
  0xba   : > { %1670 = vrot.lane.b32.xlu1 %v1669_v44, %s2003_s8 }
  0xbb   : > { %v1606_v59 = vpop.permute.xlu1 %1605 }
  0xbc   : > { %1665 = vrot.lane.b32.xlu0 %v1664_v45, %s2010_s15  ;;  %v1596_v56 = vpop.permute.xlu0 %1595  ;;  %v1608_v24 = vunpack.i.h.bf16 %v1606_v59  ;;  %v1607_v25 = vunpack.i.l.bf16 %v1606_v59  ;;  %v270_v59 = vld [vmem:[%s2919_s2 + $0x30] sm:$0x3f] }
  0xbd   : > { %v1597_v58 = vunpack.i.l.bf16 %v1596_v56  ;;  %v1598_v63 = vunpack.i.h.bf16 %v1596_v56 }
  0xbf   : > { %v395_v11 = vsel %vm316_vm2, %v1548_v3, %v1598_v63 }
  0xc0   : > { %1655 = vrot.lane.b32.xlu2 %v1654_v47, %s2010_s15  ;;  %v264_v47 = vld [vmem:[%s2919_s2] sm:$0xff] }
  0xc2   : > { %578 = vperm.xlu1 %1680, %v265_v29   ;;  %v254_v29 = vld [vmem:[#allocation2 + $0x20] sm:$0xff] }
  0xc4   : > { %v1611_v55 = vpop.permute.xlu0 %1610  ;;  %573 = vperm.xlu0 %1679, %v264_v47  }
  0xc5   : > { %v1613_v36 = vunpack.i.h.bf16 %v1611_v55  ;;  %v1612_v38 = vunpack.i.l.bf16 %v1611_v55 }
  0xc7   : > { %v393_v1 = vsel %vm331_vm0, %v1578_v43, %v1613_v36  ;;  %v259_v36 = vld [vmem:[#allocation2 + $0x48] sm:$0xff] }
  0xc8   : > { %1675 = vrot.lane.b32.xlu2 %v1674_v51, %s2010_s15 }
  0xca   : > { %588 = vperm.xlu1 %1680, %v267_v20  }
  0xd2   : > { %603 = vperm.xlu1 %1680, %v270_v59  }
  0xfa   : > { %v1621_v2 = vpop.permute.xlu2 %1620 }
  0xfb   : > { %v1622_v26 = vunpack.i.l.bf16 %v1621_v2  ;;  %v1623_v30 = vunpack.i.h.bf16 %v1621_v2 }
  0xfd   : > { %v559_v35 = vsel %vm549_vm3, %v1608_v24, %v1622_v26  ;;  %v558_v42 = vsel %vm549_vm3, %v1568_v34, %v1623_v30  ;;  %v251_v26 = vld [vmem:[#allocation2 + $0x8] sm:$0xff]  ;;  %v268_v30 = vld [vmem:[%s2919_s2 + $0x20] sm:$0xff]  ;;  %v257_v34 = vld [vmem:[#allocation2 + $0x38] sm:$0xff] }
 0x102   : > { %v1626_v57 = vpop.permute.xlu2 %1625 }
 0x103   : > { %v1628_v60 = vunpack.i.h.bf16 %v1626_v57  ;;  %v1627_v0 = vunpack.i.l.bf16 %v1626_v57 }
 0x105   : > { %v565_v62 = vsel %vm549_vm3, %v396_v61, %v1627_v0  ;;  %v564_v53 = vsel %vm549_vm3, %v1597_v58, %v1628_v60  ;;  %v269_v60 = vld [vmem:[%s2919_s2 + $0x28] sm:$0xff]  ;;  %v1583_v0 = vunpack.i.h.bf16 %v2170_v33  ;;  %v1522_v61 = vunpack.i.l.bf16 %v2140_v54 }
 0x106   : > { %631 = vmatpush.msra.mxu0 %v565_v62  ;;  %598 = vperm.xlu0 %1679, %v269_v60  }
 0x108   : > { %632 = vmatpush.msra.mxu0 %v564_v53 }
 0x10a   : > { %v2195_v14 = vpop.permute.xlu2 %1630 }
 0x10b   : > { %v1636_v5 = vpop.permute.xlu1 %1635  ;;  %v1633_v2 = vunpack.i.h.bf16 %v2195_v14  ;;  %v1632_v52 = vunpack.i.l.bf16 %v2195_v14 }
 0x10c   : > { %v1638_v9 = vunpack.i.h.bf16 %v1636_v5  ;;  %v1637_v10 = vunpack.i.l.bf16 %v1636_v5  ;;  %v1523_v5 = vunpack.i.h.bf16 %v2140_v54 }
 0x10d   : > { %v392_v3 = vsel %vm316_vm2, %v1583_v0, %v1633_v2 }
 0x10e   : > { %v563_v15 = vsel %vm549_vm3, %v395_v11, %v1637_v10  ;;  %v562_v16 = vsel %vm549_vm3, %v1602_v13, %v1638_v9  ;;  %v391_v11 = vsel %vm301_vm1, %v2078_v12, %v1522_v61  ;;  %v250_v12 = vld [vmem:[#allocation2] sm:$0xff] }
 0x10f   : > { %633 = vmatpush.msra.mxu0 %v563_v15 }
 0x111   : > { %634 = vmatpush.msra.mxu0 %v562_v16 }
 0x112   : > { %v2205_v4 = vpop.permute.xlu2 %1640 }
 0x113   : > { %v387_v19 = vpop.permute.xlu1 %386  ;;  %v1642_v62 = vunpack.i.l.bf16 %v2205_v4  ;;  %v1643_v63 = vunpack.i.h.bf16 %v2205_v4  ;;  %v255_v4 = vld [vmem:[#allocation2 + $0x28] sm:$0xff] }
 0x114   : > { %v1616_v6 = vpop.permute.xlu0 %1615 }
 0x115   : > { %v1618_v21 = vunpack.i.h.bf16 %v1616_v6  ;;  %v1617_v22 = vunpack.i.l.bf16 %v1616_v6  ;;  %v553_v10 = vsel %vm549_vm3, %v1523_v5, %v1642_v62  ;;  %v552_v15 = vsel %vm549_vm3, %v391_v11, %v1643_v63 }
 0x117   : > { %v561_v27 = vsel %vm549_vm3, %v394_v23, %v1617_v22  ;;  %v560_v32 = vsel %vm549_vm3, %v1607_v25, %v1618_v21 }
 0x118   : > { %635 = vmatpush.msra.mxu0 %v561_v27 }
 0x11a   : > { %636 = vmatpush.msra.mxu0 %v560_v32  ;;  %v1656_v48 = vpop.permute.xlu2 %1655  ;;  %v256_v32 = vld [vmem:[#allocation2 + $0x30] sm:$0xff] }
 0x11b   : > { %v1657_v51 = vunpack.i.l.bf16 %v1656_v48  ;;  %v1658_v33 = vunpack.i.h.bf16 %v1656_v48 }
 0x11c   : > { %v1646_v37 = vpop.permute.xlu1 %1645  ;;  %637 = vmatpush.msra.mxu0 %v559_v35  ;;  %v258_v35 = vld [vmem:[#allocation2 + $0x40] sm:$0xff] }
 0x11d   : > { %v1648_v39 = vunpack.i.h.bf16 %v1646_v37  ;;  %v1647_v41 = vunpack.i.l.bf16 %v1646_v37  ;;  %v551_v21 = vsel %vm549_vm3, %v2073_v8, %v1658_v33  ;;  %v252_v8 = vld [vmem:[#allocation2 + $0x10] sm:$0xff] }
 0x11e   : > { %638 = vmatpush.msra.mxu0 %v558_v42  ;;  %v527_v44 = vpop.permute.xlu0 %526  ;;  %v260_v37 = vld [vmem:[#allocation2 + $0x50] sm:$0xff] }
 0x11f   : > { %v557_v45 = vsel %vm549_vm3, %v1612_v38, %v1647_v41  ;;  %v570_v46 = vsel %vm549_vm3, %v387_v19, %v527_v44  ;;  %v556_v31 = vsel %vm549_vm3, %v393_v1, %v1648_v39  ;;  %v261_v38 = vld [vmem:[#allocation2 + $0x58] sm:$0xff]  ;;  %v262_v39 = vld [vmem:[#allocation2 + $0x60] sm:$0x3f]  ;;  %v263_v41 = vld [vmem:[#allocation2 + $0x68] sm:$0x3f] }
 0x120   : > { %639 = vmatpush.msra.mxu0 %v557_v45  ;;  %1445 = vmatpush.msk.msra.mxu1 %vm301_vm1, %v570_v46 }
 0x122   : > { %640 = vmatpush.msra.mxu0 %v556_v31  ;;  %v1676_v13 = vpop.permute.xlu2 %1675 }
 0x123   : > { %v1677_v54 = vunpack.i.l.bf16 %v1676_v13  ;;  %v1678_v23 = vunpack.i.h.bf16 %v1676_v13 }
 0x124   : > { %v1651_v50 = vpop.permute.xlu1 %1650 }
 0x125   : > { %v1652_v40 = vunpack.i.l.bf16 %v1651_v50  ;;  %v1653_v16 = vunpack.i.h.bf16 %v1651_v50 }
 0x126   : > { %v1661_v49 = vpop.permute.xlu0 %1660 }
 0x127   : > { %v1663_v56 = vunpack.i.h.bf16 %v1661_v49  ;;  %v1662_v57 = vunpack.i.l.bf16 %v1661_v49  ;;  %v569_v58 = vsel %vm549_vm3, %v1652_v40, %v1657_v51 }
 0x128   : > { %681 = vmatpush.msra.mxu1 %v569_v58 }
 0x129   : > { %v555_v53 = vsel %vm549_vm3, %v1632_v52, %v1662_v57  ;;  %v554_v55 = vsel %vm549_vm3, %v392_v3, %v1663_v56 }
 0x12a   : > { %641 = vmatpush.msra.mxu0 %v555_v53 }
 0x12c   : > { %v1671_v9 = vpop.permute.xlu1 %1670  ;;  %642 = vmatpush.msra.mxu0 %v554_v55 }
 0x12d   : > { %v1672_v17 = vunpack.i.l.bf16 %v1671_v9  ;;  %v1673_v6 = vunpack.i.h.bf16 %v1671_v9 }
 0x12e   : > { %v1666_v14 = vpop.permute.xlu0 %1665  ;;  %643 = vmatpush.msra.mxu0 %v553_v10 }
 0x12f   : > { %v1668_v18 = vunpack.i.h.bf16 %v1666_v14  ;;  %v1667_v19 = vunpack.i.l.bf16 %v1666_v14  ;;  %v567_v25 = vsel %vm549_vm3, %v1672_v17, %v1677_v54  ;;  %v566_v27 = vsel %vm549_vm3, %v1673_v6, %v1678_v23 }
 0x130   : > { %644 = vmatpush.msra.mxu0 %v552_v15 }
 0x131   : > { %v568_v22 = vsel %vm549_vm3, %v1653_v16, %v1667_v19  ;;  %v550_v24 = vsel %vm549_vm3, %v2071_v7, %v1668_v18  ;;  %v266_v7 = vld [vmem:[%s2919_s2 + $0x10] sm:$0xff] }
 0x132   : > { %645 = vmatpush.msra.mxu0 %v551_v21  ;;  %682 = vmatpush.msra.mxu1 %v568_v22 }
 0x133   : > { %583 = vperm.xlu2 %1681, %v266_v7  }
 0x134   : > { %646 = vmatpush.msra.mxu0 %v550_v24  ;;  %683 = vmatpush.msra.mxu1 %v567_v25  ;;  %v579_v1 = vpop.permute.xlu1 %578 }
 0x135   : > { %647 = vmatmul.f32.vlgmr.msra.gmra.mxu0 %v250_v12 }
 0x136   : > { %684 = vmatpush.msra.mxu1 %v566_v27  ;;  %v574_v42 = vpop.permute.xlu0 %573 }
 0x137   : > { %1446 = vmatmul.msk.f32.vlgmr.msra.gmra.mxu1 %vm606_vm4, %v251_v26 }
 0x13b   : > { %593 = vperm.xlu2 %1681, %v268_v30  }
 0x13c   : > { %v589_v9 = vpop.permute.xlu1 %588 }
 0x13d   : > { %650 = vmatmul.f32.gmra.mxu0 %v252_v8 }
 0x13f   : > { %1447 = vmatmul.msk.f32.gmra.mxu1 %vm606_vm4, %v253_v28 }
 0x145   : > { %653 = vmatmul.f32.gmra.mxu0 %v254_v29 }
 0x147   : > { %1448 = vmatmul.msk.f32.gmra.mxu1 %vm606_vm4, %v255_v4 }
 0x14d   : > { %656 = vmatmul.f32.gmra.mxu0 %v256_v32 }
 0x14f   : > { %1449 = vmatmul.msk.f32.gmra.mxu1 %vm606_vm4, %v257_v34 }
 0x155   : > { %659 = vmatmul.f32.gmra.mxu0 %v258_v35 }
 0x157   : > { %1450 = vmatmul.msk.f32.gmra.mxu1 %vm606_vm4, %v259_v36 }
 0x15d   : > { %662 = vmatmul.f32.gmra.mxu0 %v260_v37 }
 0x15f   : > { %1451 = vmatmul.msk.f32.gmra.mxu1 %vm606_vm4, %v261_v38 }
 0x165   : > { %665 = vmatmul.f32.gmra.mxu0 %v262_v39 }
 0x167   : > { %1452 = vmatmul.msk.f32.gmra.mxu1 %vm606_vm4, %v263_v41 }
 0x178   : > { %v599_v35 = vpop.permute.xlu0 %598 }
 0x18d   : > { %v584_v57 = vpop.permute.xlu2 %583 }
 0x195   : > { %v594_v21 = vpop.permute.xlu2 %593 }
 0x1b2   : > { %v648_v43 = vpop.f32.mrf.mxu0 }
 0x1b3   : > { %v649_v44 = vadd.f32 %v648_v43, %v574_v42 }
 0x1b4   : > { %v686_v45 = vpop.f32.mrf.mxu1 }
 0x1b5   : > { %v687_v46 = vadd.f32 %v686_v45, %v649_v44 }
 0x1b7   : > { %v2264_v20 = vmax.f32 %v687_v46, 0.0 }
 0x1b9   : > { %v2267_v47 = vrot.slane %v2264_v20, 6  ;;  %v758_v2 = vrot.slane %v2264_v20, 4  ;;  %v2276_v52 = vrot.slane %v2264_v20, 2 }
 0x1ba   : > { %v651_v31 = vpop.f32.mrf.mxu0 }
 0x1bb   : > { %v652_v48 = vadd.f32 %v651_v31, %v579_v1  ;;  %808 = vrot.lane.b32.xlu1 %v2267_v47, %s2007_s12 }
 0x1bc   : > { %v689_v50 = vpop.f32.mrf.mxu1 }
 0x1bd   : > { %v690_v51 = vadd.f32 %v689_v50, %v652_v48  ;;  %v604_v50 = vpop.permute.xlu1 %603 }
 0x1bf   : > { %v2271_v40 = vmax.f32 %v690_v51, 0.0 }
 0x1c1   : > { %v759_v49 = vrot.slane %v2271_v40, 4  ;;  %v722_v56 = vrot.slane %v2271_v40, 2  ;;  %v796_v19 = vrot.slane %v2271_v40, 6 }
 0x1c2   : > { %v654_v58 = vpop.f32.mrf.mxu0 }
 0x1c3   : > { %v655_v59 = vadd.f32 %v654_v58, %v584_v57  ;;  %v760_v60 = vsel %vm316_vm2, %v758_v2, %v759_v49  ;;  %v2282_v0 = vsel %vm331_vm0, %v2276_v52, %v722_v56  ;;  %v2311_v29 = vsel %vm301_vm1, %v2267_v47, %v796_v19 }
 0x1c4   : > { %v692_v61 = vpop.f32.mrf.mxu1  ;;  %v1687_v62 = vpack.i.bf16 %v760_v60, %v758_v2  ;;  %v1682_v53 = vpack.i.bf16 %v2282_v0, %v2276_v52  ;;  %v1867_v63 = vpack.i.bf16 %v2276_v52, %v2282_v0  ;;  %v1692_v13 = vpack.i.bf16 %v758_v2, %v760_v60 }
 0x1c5   : > { %v693_v3 = vadd.f32 %v692_v61, %v655_v59 }
 0x1c6   : > { %1688 = vrot.lane.b32.xlu0 %v1687_v62, %s2008_s13  ;;  %1683 = vrot.lane.b32.xlu2 %v1682_v53, %s2004_s9 }
 0x1c7   : > { %v2290_v5 = vmax.f32 %v693_v3, 0.0 }
 0x1c9   : > { %v1697_v55 = vpack.i.bf16 %v2271_v40, %v2290_v5  ;;  %v761_v15 = vrot.slane %v2290_v5, 4  ;;  %v798_v16 = vrot.slane %v2290_v5, 6  ;;  %v724_v18 = vrot.slane %v2290_v5, 2 }
 0x1ca   : > { %v657_v33 = vpop.f32.mrf.mxu0 }
 0x1cb   : > { %v658_v10 = vadd.f32 %v657_v33, %v589_v9  ;;  %1698 = vrot.lane.b32.xlu1 %v1697_v55, %s2002_s7  ;;  %v762_v12 = vsel %vm316_vm2, %v759_v49, %v761_v15  ;;  %v799_v23 = vsel %vm301_vm1, %v796_v19, %v798_v16  ;;  %v725_v26 = vsel %vm331_vm0, %v722_v56, %v724_v18 }
 0x1cc   : > { %v695_v11 = vpop.f32.mrf.mxu1  ;;  %v1702_v30 = vpack.i.bf16 %v2311_v29, %v799_v23 }
 0x1cd   : > { %v696_v14 = vadd.f32 %v695_v11, %v658_v10 }
 0x1ce   : > { %1693 = vrot.lane.b32.xlu2 %v1692_v13, %s2005_s10 }
 0x1cf   : > { %v2298_v17 = vmax.f32 %v696_v14, 0.0 }
 0x1d1   : > { %v763_v54 = vrot.slane %v2298_v17, 4  ;;  %v726_v6 = vrot.slane %v2298_v17, 2  ;;  %v800_v32 = vrot.slane %v2298_v17, 6 }
 0x1d2   : > { %v660_v22 = vpop.f32.mrf.mxu0 }
 0x1d3   : > { %v661_v24 = vadd.f32 %v660_v22, %v594_v21  ;;  %v764_v25 = vsel %vm316_vm2, %v761_v15, %v763_v54  ;;  %v727_v27 = vsel %vm331_vm0, %v724_v18, %v726_v6  ;;  %v801_v37 = vsel %vm301_vm1, %v798_v16, %v800_v32 }
 0x1d4   : > { %v698_v8 = vpop.f32.mrf.mxu1  ;;  %v1712_v28 = vpack.i.bf16 %v764_v25, %v762_v12  ;;  %v1707_v7 = vpack.i.bf16 %v727_v27, %v725_v26  ;;  %v1717_v41 = vpack.i.bf16 %v762_v12, %v764_v25  ;;  %v1722_v44 = vpack.i.bf16 %v799_v23, %v801_v37 }
 0x1d5   : > { %v699_v4 = vadd.f32 %v698_v8, %v661_v24  ;;  %v1727_v60 = vpack.i.bf16 %v725_v26, %v727_v27 }
 0x1d6   : > { %1713 = vrot.lane.b32.xlu1 %v1712_v28, %s2008_s13  ;;  %1708 = vrot.lane.b32.xlu0 %v1707_v7, %s2004_s9 }
 0x1d7   : > { %1703 = vrot.lane.b32.xlu2 %v1702_v30, %s2007_s12  ;;  %v2318_v34 = vmax.f32 %v699_v4, 0.0 }
 0x1d9   : > { %v1732_v42 = vpack.i.bf16 %v2298_v17, %v2318_v34  ;;  %v728_v45 = vrot.slane %v2318_v34, 2  ;;  %v765_v1 = vrot.slane %v2318_v34, 4  ;;  %v802_v3 = vrot.slane %v2318_v34, 6 }
 0x1da   : > { %v663_v36 = vpop.f32.mrf.mxu0 }
 0x1db   : > { %v664_v38 = vadd.f32 %v663_v36, %v599_v35  ;;  %v729_v2 = vsel %vm331_vm0, %v726_v6, %v728_v45  ;;  %v766_v57 = vsel %vm316_vm2, %v763_v54, %v765_v1  ;;  %v803_v33 = vsel %vm301_vm1, %v800_v32, %v802_v3 }
 0x1dc   : > { %v701_v39 = vpop.f32.mrf.mxu1  ;;  %v1737_v14 = vpack.i.bf16 %v801_v37, %v803_v33 }
 0x1dd   : > { %v702_v43 = vadd.f32 %v701_v39, %v664_v38 }
 0x1de   : > { %1718 = vrot.lane.b32.xlu1 %v1717_v41, %s2005_s10  ;;  %1733 = vrot.lane.b32.xlu0 %v1732_v42, %s2002_s7 }
 0x1df   : > { %v2326_v46 = vmax.f32 %v702_v43, 0.0  ;;  %1723 = vrot.lane.b32.xlu2 %v1722_v44, %s2003_s8 }
 0x1e1   : > { %v730_v31 = vrot.slane %v2326_v46, 2  ;;  %v767_v48 = vrot.slane %v2326_v46, 4  ;;  %v804_v9 = vrot.slane %v2326_v46, 6 }
 0x1e2   : > { %v666_v51 = vpop.f32.mrf.mxu0 }
 0x1e3   : > { %v667_v49 = vadd.f32 %v666_v51, %v604_v50  ;;  %v731_v56 = vsel %vm331_vm0, %v728_v45, %v730_v31  ;;  %v768_v58 = vsel %vm316_vm2, %v765_v1, %v767_v48  ;;  %v805_v11 = vsel %vm301_vm1, %v802_v3, %v804_v9 }
 0x1e4   : > { %v704_v59 = vpop.f32.mrf.mxu1  ;;  %v1762_v61 = vpack.i.bf16 %v729_v2, %v731_v56  ;;  %v1747_v62 = vpack.i.bf16 %v768_v58, %v766_v57  ;;  %v1742_v21 = vpack.i.bf16 %v731_v56, %v729_v2  ;;  %v1752_v23 = vpack.i.bf16 %v766_v57, %v768_v58 }
 0x1e5   : > { %v705_v53 = vadd.f32 %v704_v59, %v667_v49  ;;  %v1757_v25 = vpack.i.bf16 %v803_v33, %v805_v11 }
 0x1e6   : > { %1728 = vrot.lane.b32.xlu1 %v1727_v60, %s2006_s11  ;;  %1763 = vrot.lane.b32.xlu0 %v1762_v61, %s2006_s11 }
 0x1e7   : > { %v713_v55 = vmax.f32 %v705_v53, 0.0  ;;  %1748 = vrot.lane.b32.xlu2 %v1747_v62, %s2008_s13 }
 0x1e9   : > { %v806_v10 = vrot.slane %v713_v55, 6  ;;  %v1767_v16 = vpack.i.bf16 %v713_v55, %v2264_v20  ;;  %v769_v18 = vrot.slane %v713_v55, 4  ;;  %v732_v19 = vrot.slane %v713_v55, 2 }
 0x1eb   : > { %v807_v13 = vsel %vm301_vm1, %v804_v9, %v806_v10  ;;  %v770_v54 = vsel %vm316_vm2, %v767_v48, %v769_v18  ;;  %v733_v6 = vsel %vm331_vm0, %v730_v31, %v732_v19 }
 0x1ec   : > { %v1777_v15 = vpack.i.bf16 %v805_v11, %v807_v13  ;;  %v1782_v22 = vpack.i.bf16 %v770_v54, %v769_v18  ;;  %v1772_v12 = vpack.i.bf16 %v732_v19, %v733_v6  ;;  %v1792_v24 = vpack.i.bf16 %v807_v13, %v2267_v47 }
 0x1ed   : > { %v1797_v26 = vpack.i.bf16 %v733_v6, %v732_v19 }
 0x1ee   : > { %1738 = vrot.lane.b32.xlu1 %v1737_v14, %s2007_s12  ;;  %1778 = vrot.lane.b32.xlu0 %v1777_v15, %s2007_s12 }
 0x1ef   : > { %1768 = vrot.lane.b32.xlu2 %v1767_v16, %s2002_s7 }
 0x1f6   : > { %1743 = vrot.lane.b32.xlu1 %v1742_v21, %s2004_s9  ;;  %1783 = vrot.lane.b32.xlu0 %v1782_v22, %s2008_s13 }
 0x1f7   : > { %1773 = vrot.lane.b32.xlu2 %v1772_v12, %s2004_s9 }
 0x1fe   : > { %1753 = vrot.lane.b32.xlu1 %v1752_v23, %s2005_s10  ;;  %1793 = vrot.lane.b32.xlu0 %v1792_v24, %s2003_s8 }
 0x1ff   : > { %1788 = vrot.lane.b32.xlu2 %v1782_v22, %s2005_s10 }
 0x206   : > { %1758 = vrot.lane.b32.xlu1 %v1757_v25, %s2003_s8 }
 0x20e   : > { %931 = vrot.lane.b32.xlu1 %v713_v55, %s2009_s14 }
 0x216   : > { %1798 = vrot.lane.b32.xlu1 %v1797_v26, %s2006_s11 }
 0x220   : > { %v2360_v27 = vpop.permute.xlu2 %1683 }
 0x221   : > { %v1685_v8 = vunpack.i.l.bf16 %v2360_v27  ;;  %v2925_v56 = vunpack.i.h.bf16 %v2360_v27 }
 0x223   : > { %v2364_v47 = vsel %vm331_vm0, %v713_v55, %v1685_v8 }
 0x228   : > { %v2366_v28 = vpop.permute.xlu2 %1693 }
 0x22d   : > { %v2370_v4 = vpop.permute.xlu1 %808 }
 0x231   : > { %v2368_v7 = vpop.permute.xlu2 %1703 }
 0x232   : > { %v2937_v44 = vunpack.i.l.bf16 %v2368_v7  ;;  %v2932_v51 = vunpack.i.h.bf16 %v2368_v7 }
 0x234   : > { %v1812_v57 = vpack.i.bf16 %v2925_v56, %v2932_v51 }
 0x238   : > { %v2372_v30 = vpop.permute.xlu0 %1688 }
 0x239   : > { %v1691_v32 = vunpack.i.h.bf16 %v2372_v30  ;;  %v2375_v35 = vpop.permute.xlu2 %1723  ;;  %v1690_v55 = vunpack.i.l.bf16 %v2372_v30 }
 0x23b   : > { %v1807_v36 = vpack.i.bf16 %v1691_v32, %v2290_v5 }
 0x23d   : > { %v2380_v37 = vpop.permute.xlu1 %1698  ;;  %1808 = vrot.lane.b32.xlu2 %v1807_v36, %s2009_s14 }
 0x23e   : > { %v1700_v38 = vunpack.i.l.bf16 %v2380_v37  ;;  %v1701_v61 = vunpack.i.h.bf16 %v2380_v37 }
 0x240   : > { %v1817_v41 = vpack.i.bf16 %v2298_v17, %v1700_v38 }
 0x241   : > { %v2384_v39 = vpop.permute.xlu2 %1748 }
 0x242   : > { %v2926_v22 = vunpack.i.h.bf16 %v2384_v39 }
 0x245   : > { %1818 = vrot.lane.b32.xlu2 %v1817_v41, %s2009_s14 }
 0x248   : > { %v2390_v42 = vpop.permute.xlu1 %1713  ;;  %v2392_v43 = vpop.permute.xlu0 %1708 }
 0x249   : > { %v2927_v45 = vunpack.i.l.bf16 %v2392_v43  ;;  %v2396_v1 = vpop.permute.xlu2 %1768  ;;  %v1715_v58 = vunpack.i.l.bf16 %v2390_v42  ;;  %v2930_v11 = vunpack.i.h.bf16 %v2392_v43 }
 0x24a   : > { %v1770_v31 = vunpack.i.l.bf16 %v2396_v1 }
 0x24b   : > { %v1827_v48 = vpack.i.bf16 %v2927_v45, %v2937_v44  ;;  %v1822_v53 = vpack.i.bf16 %v1701_v61, %v1715_v58 }
 0x24c   : > { %v1802_v50 = vpack.i.bf16 %v2271_v40, %v1770_v31 }
 0x24d   : > { %1828 = vrot.lane.b32.xlu1 %v1827_v48, %s2009_s14 }
 0x24e   : > { %1803 = vrot.lane.b32.xlu0 %v1802_v50, %s2009_s14 }
 0x250   : > { %v2409_v2 = vpop.permute.xlu1 %1718  ;;  %v2411_v49 = vpop.permute.xlu0 %1733 }
 0x251   : > { %v2425_v62 = vpop.permute.xlu2 %1773  ;;  %v1736_v9 = vunpack.i.h.bf16 %v2411_v49  ;;  %v1735_v54 = vunpack.i.l.bf16 %v2411_v49 }
 0x252   : > { %v1776_v3 = vunpack.i.h.bf16 %v2425_v62  ;;  %v2935_v41 = vunpack.i.l.bf16 %v2425_v62 }
 0x253   : > { %v1832_v19 = vpack.i.bf16 %v2318_v34, %v1736_v9  ;;  %v1842_v25 = vpack.i.bf16 %v2326_v46, %v1735_v54 }
 0x254   : > { %v2443_v15 = vsel %vm316_vm2, %v1776_v3, %v1690_v55  ;;  %v2923_v55 = vunpack.i.h.bf16 %v2390_v42 }
 0x256   : > { %1813 = vrot.lane.b32.xlu0 %v1812_v57, %s2009_s14  ;;  %v1862_v57 = vpack.i.bf16 %v2935_v41, %v2264_v20 }
 0x258   : > { %v2420_v59 = vpop.permute.xlu1 %1728  ;;  %v2422_v60 = vpop.permute.xlu0 %1763 }
 0x259   : > { %v2940_v49 = vunpack.i.l.bf16 %v2420_v59 }
 0x25e   : > { %1823 = vrot.lane.b32.xlu0 %v1822_v53, %s2009_s14 }
 0x260   : > { %v2435_v33 = vpop.permute.xlu1 %1738  ;;  %v2437_v10 = vpop.permute.xlu0 %1778 }
 0x261   : > { %v2938_v13 = vunpack.i.h.bf16 %v2435_v33  ;;  %v1780_v14 = vunpack.i.l.bf16 %v2437_v10  ;;  %v1740_v12 = vunpack.i.l.bf16 %v2435_v33  ;;  %v1781_v48 = vunpack.i.h.bf16 %v2437_v10 }
 0x263   : > { %v1837_v16 = vpack.i.bf16 %v2930_v11, %v2938_v13  ;;  %v1857_v18 = vpack.i.bf16 %v1780_v14, %v2443_v15 }
 0x265   : > { %1838 = vrot.lane.b32.xlu2 %v1837_v16, %s2009_s14  ;;  %1858 = vrot.lane.b32.xlu1 %v1857_v18, %s2009_s14  ;;  %v2924_v18 = vunpack.i.l.bf16 %v2384_v39 }
 0x266   : > { %1833 = vrot.lane.b32.xlu0 %v1832_v19, %s2009_s14 }
 0x267   : > { %v1872_v52 = vpack.i.bf16 %v2923_v55, %v2924_v18 }
 0x268   : > { %v2459_v6 = vpop.permute.xlu1 %1743  ;;  %v2461_v21 = vpop.permute.xlu0 %1783 }
 0x269   : > { %v2931_v23 = vunpack.i.l.bf16 %v2459_v6  ;;  %v2929_v24 = vunpack.i.h.bf16 %v2461_v21  ;;  %v2933_v36 = vunpack.i.h.bf16 %v2459_v6  ;;  %v1785_v3 = vunpack.i.l.bf16 %v2461_v21 }
 0x26b   : > { %v1847_v26 = vpack.i.bf16 %v2931_v23, %v1740_v12  ;;  %v1882_v8 = vpack.i.bf16 %v2926_v22, %v2929_v24  ;;  %v1852_v50 = vpack.i.bf16 %v2933_v36, %v1781_v48  ;;  %v2505_v16 = vsel %vm301_vm1, %v1785_v3, %v2370_v4 }
 0x26c   : > { %v2936_v23 = vunpack.i.h.bf16 %v2409_v2 }
 0x26d   : > { %1843 = vrot.lane.b32.xlu2 %v1842_v25, %s2009_s14  ;;  %1883 = vrot.lane.b32.xlu1 %v1882_v8, %s2009_s14  ;;  %v1877_v25 = vpack.i.bf16 %v2364_v47, %v2505_v16 }
 0x26e   : > { %1848 = vrot.lane.b32.xlu0 %v1847_v26, %s2009_s14  ;;  %v2928_v26 = vunpack.i.l.bf16 %v2409_v2 }
 0x270   : > { %v2493_v53 = vpop.permute.xlu1 %1753 }
 0x271   : > { %v2934_v18 = vunpack.i.l.bf16 %v2493_v53  ;;  %v1756_v13 = vunpack.i.h.bf16 %v2493_v53 }
 0x275   : > { %1853 = vrot.lane.b32.xlu2 %v1852_v50, %s2009_s14  ;;  %839 = vrot.lane.b32.xlu1 %v2326_v46, %s2002_s7 }
 0x276   : > { %1863 = vrot.lane.b32.xlu0 %v1862_v57, %s2009_s14  ;;  %v2531_v57 = vpop.permute.xlu0 %1793 }
 0x277   : > { %v2941_v41 = vunpack.i.h.bf16 %v2531_v57 }
 0x278   : > { %v2508_v19 = vpop.permute.xlu1 %1758 }
 0x27d   : > { %1868 = vrot.lane.b32.xlu2 %v1867_v63, %s2006_s11  ;;  %v2522_v63 = vpop.permute.xlu2 %1788 }
 0x27e   : > { %900 = vrot.lane.b32.xlu0 %v2311_v29, %s2003_s8 }
 0x280   : > { %v2518_v0 = vpop.permute.xlu1 %931 }
 0x285   : > { %1878 = vrot.lane.b32.xlu2 %v1877_v25, %s2009_s14 }
 0x286   : > { %1873 = vrot.lane.b32.xlu0 %v1872_v52, %s2009_s14 }
 0x288   : > { %v2537_v52 = vpop.permute.xlu1 %1798 }
 0x28e   : > { %1060 = vrot.lane.b32.xlu0 %v2518_v0, %s2009_s14 }
 0x297   : > { %v1809_v29 = vpop.permute.xlu2 %1808 }
 0x298   : > { %v2549_v24 = vunpack.i.l.bf16 %v1809_v29 }
 0x29f   : > { %v1819_v4 = vpop.permute.xlu2 %1818 }
 0x2a0   : > { %v2525_v8 = vunpack.i.h.bf16 %v1819_v4 }
 0x2a2   : > { %v1897_v50 = vpack.i.bf16 %v2928_v26, %v2525_v8 }
 0x2a4   : > { %1898 = vrot.lane.b32.xlu0 %v1897_v50, %s2009_s14 }
 0x2bf   : > { %v2533_v3 = vpop.permute.xlu2 %1838  ;;  %v2551_v11 = vpop.permute.xlu1 %1828 }
 0x2c0   : > { %v2535_v25 = vpop.permute.xlu0 %1803 }
 0x2c1   : > { %v2634_v10 = vunpack.i.h.bf16 %v2535_v25 }
 0x2c7   : > { %v1844_v55 = vpop.permute.xlu2 %1843 }
 0x2c8   : > { %v2540_v56 = vunpack.i.h.bf16 %v1844_v55  ;;  %v1845_v22 = vunpack.i.l.bf16 %v1844_v55  ;;  %v2542_v45 = vpop.permute.xlu0 %1813  ;;  %v1811_v55 = vunpack.i.h.bf16 %v1809_v29  ;;  %v1801_v29 = vunpack.i.h.bf16 %v2537_v52 }
 0x2ca   : > { %v1149_v26 = vsel %vm1117_vm5, %v1735_v54, %v1845_v22  ;;  %v1887_v50 = vpack.i.bf16 %v2934_v18, %v2540_v56  ;;  %v1902_v54 = vpack.i.bf16 %v2936_v23, %v2549_v24  ;;  %v1932_v30 = vpack.i.bf16 %v1801_v29, %v2941_v41 }
 0x2cb   : > { %1244 = vmatpush.msra.mxu3 %v1149_v26 }
 0x2cc   : > { %1888 = vrot.lane.b32.xlu1 %v1887_v50, %s2009_s14  ;;  %v1132_v50 = vsel %vm1117_vm5, %v1691_v32, %v1811_v55 }
 0x2cf   : > { %v2561_v26 = vpop.permute.xlu2 %1853 }
 0x2d0   : > { %v1824_v51 = vpop.permute.xlu0 %1823 }
 0x2d1   : > { %v1825_v36 = vunpack.i.l.bf16 %v1824_v51  ;;  %v1826_v55 = vunpack.i.h.bf16 %v1824_v51 }
 0x2d3   : > { %v1133_v22 = vsel %vm1117_vm5, %v1715_v58, %v1825_v36  ;;  %v1820_v58 = vunpack.i.l.bf16 %v1819_v4 }
 0x2d4   : > { %1215 = vmatpush.msra.mxu2 %v1133_v22  ;;  %1903 = vrot.lane.b32.xlu1 %v1902_v54, %s2009_s14 }
 0x2d5   : > { %v1147_v51 = vsel %vm1117_vm5, %v1700_v38, %v1820_v58  ;;  %v1791_v58 = vunpack.i.h.bf16 %v2522_v63 }
 0x2d6   : > { %1216 = vmatpush.msra.mxu2 %v1132_v50  ;;  %v1805_v50 = vunpack.i.l.bf16 %v2535_v25  ;;  %v2943_v25 = vunpack.i.l.bf16 %v2368_v7 }
 0x2d7   : > { %v1859_v18 = vpop.permute.xlu1 %1858 }
 0x2d8   : > { %v1860_v23 = vunpack.i.l.bf16 %v1859_v18  ;;  %v1834_v44 = vpop.permute.xlu0 %1833 }
 0x2d9   : > { %v2569_v36 = vunpack.i.h.bf16 %v1834_v44  ;;  %v1835_v54 = vunpack.i.l.bf16 %v1834_v44  ;;  %v1795_v44 = vunpack.i.l.bf16 %v2531_v57 }
 0x2da   : > { %v1131_v32 = vsel %vm1117_vm5, %v2443_v15, %v1860_v23  ;;  %v2592_v15 = vpop.permute.xlu2 %1868  ;;  %v1861_v23 = vunpack.i.h.bf16 %v1859_v18  ;;  %v1145_v18 = vsel %vm1117_vm5, %v1770_v31, %v1805_v50  ;;  %v1840_v31 = vunpack.i.l.bf16 %v2533_v3 }
 0x2db   : > { %1217 = vmatpush.msra.mxu2 %v1131_v32  ;;  %v1148_v22 = vsel %vm1117_vm5, %v1736_v9, %v1835_v54  ;;  %v1892_v4 = vpack.i.bf16 %v1756_v13, %v2569_v36  ;;  %v1790_v9 = vunpack.i.l.bf16 %v2522_v63  ;;  %v2939_v32 = vunpack.i.l.bf16 %v2375_v35 }
 0x2dc   : > { %1245 = vmatpush.msra.mxu3 %v1148_v22  ;;  %1933 = vrot.lane.b32.xlu1 %v1932_v30, %s2009_s14  ;;  %v1146_v30 = vsel %vm1117_vm5, %v1701_v61, %v1826_v55  ;;  %v1144_v55 = vsel %vm1117_vm5, %v1780_v14, %v1861_v23  ;;  %v1871_v14 = vunpack.i.h.bf16 %v2592_v15 }
 0x2dd   : > { %1893 = vrot.lane.b32.xlu2 %v1892_v4, %s2009_s14  ;;  %v2601_v38 = vsel %vm301_vm1, %v1790_v9, %v1795_v44  ;;  %v1855_v4 = vunpack.i.l.bf16 %v2561_v26  ;;  %v1937_v37 = vpack.i.bf16 %v2940_v49, %v2939_v32  ;;  %v1830_v9 = vunpack.i.l.bf16 %v2551_v11 }
 0x2de   : > { %1246 = vmatpush.msra.mxu3 %v1147_v51  ;;  %v1907_v44 = vpack.i.bf16 %v1791_v58, %v2601_v38  ;;  %v1800_v51 = vunpack.i.l.bf16 %v2537_v52  ;;  %v1815_v49 = vunpack.i.l.bf16 %v2542_v45 }
 0x2df   : > { %v2594_v54 = vpop.permute.xlu1 %1883  ;;  %v1143_v50 = vsel %vm1117_vm5, %v1781_v48, %v1855_v4 }
 0x2e0   : > { %v1849_v22 = vpop.permute.xlu0 %1848  ;;  %1247 = vmatpush.msra.mxu3 %v1146_v30  ;;  %v1696_v30 = vunpack.i.h.bf16 %v2366_v28 }
 0x2e1   : > { %v1850_v61 = vunpack.i.l.bf16 %v1849_v22  ;;  %v1851_v41 = vunpack.i.h.bf16 %v1849_v22 }
 0x2e2   : > { %1248 = vmatpush.msra.mxu3 %v1145_v18  ;;  %v1695_v18 = vunpack.i.l.bf16 %v2366_v28 }
 0x2e3   : > { %v1142_v23 = vsel %vm1117_vm5, %v1740_v12, %v1850_v61  ;;  %v2942_v12 = vunpack.i.h.bf16 %v2435_v33  ;;  %v2944_v33 = vunpack.i.l.bf16 %v2425_v62  ;;  %v2945_v62 = vunpack.i.h.bf16 %v2459_v6 }
 0x2e4   : > { %1249 = vmatpush.msra.mxu3 %v1144_v55  ;;  %1938 = vrot.lane.b32.xlu1 %v1937_v37, %s2009_s14  ;;  %v1771_v37 = vunpack.i.h.bf16 %v2396_v1  ;;  %v1856_v55 = vunpack.i.h.bf16 %v2561_v26  ;;  %v2652_v26 = vsel %vm316_vm2, %v1800_v51, %v1696_v30  ;;  %v1841_v51 = vunpack.i.h.bf16 %v2533_v3 }
 0x2e5   : > { %1908 = vrot.lane.b32.xlu2 %v1907_v44, %s2009_s14  ;;  %v1879_v44 = vpop.permute.xlu2 %1878  ;;  %v1141_v61 = vsel %vm1117_vm5, %v2942_v12, %v1840_v31  ;;  %v1885_v30 = vunpack.i.l.bf16 %v2594_v54  ;;  %v2947_v3 = vunpack.i.l.bf16 %v2459_v6  ;;  %v1766_v6 = vunpack.i.h.bf16 %v2422_v60 }
 0x2e6   : > { %1250 = vmatpush.msra.mxu3 %v1143_v50  ;;  %v2646_v1 = vsel %vm331_vm0, %v1771_v37, %v1871_v14  ;;  %v1880_v37 = vunpack.i.l.bf16 %v1879_v44  ;;  %v1129_v22 = vsel %vm1117_vm5, %v2945_v62, %v1856_v55  ;;  %v1760_v55 = vunpack.i.l.bf16 %v2508_v19 }
 0x2e7   : > { %v2636_v48 = vpop.permute.xlu1 %839  ;;  %v2951_v62 = vunpack.i.h.bf16 %v2384_v39 }
 0x2e8   : > { %v1864_v4 = vpop.permute.xlu0 %1863  ;;  %1251 = vmatpush.msra.mxu3 %v1142_v23  ;;  %v1140_v23 = vsel %vm1117_vm5, %v2943_v25, %v1830_v9  ;;  %v1912_v9 = vpack.i.bf16 %v1695_v18, %v2634_v10  ;;  %v1128_v25 = vsel %vm1117_vm5, %v2947_v3, %v1851_v41  ;;  %v1765_v41 = vunpack.i.l.bf16 %v2422_v60 }
 0x2e9   : > { %v1866_v50 = vunpack.i.h.bf16 %v1864_v4  ;;  %v2639_v32 = vunpack.i.l.bf16 %v1864_v4  ;;  %v1952_v4 = vpack.i.bf16 %v2636_v48, %v2646_v1  ;;  %v1726_v3 = vunpack.i.h.bf16 %v2375_v35 }
 0x2ea   : > { %1252 = vmatpush.msra.mxu3 %v1141_v61  ;;  %v1831_v61 = vunpack.i.h.bf16 %v2551_v11  ;;  %v2948_v11 = vunpack.i.h.bf16 %v2392_v43 }
 0x2eb   : > { %v1130_v31 = vsel %vm1117_vm5, %v2944_v33, %v1866_v50  ;;  %v1922_v14 = vpack.i.bf16 %v2652_v26, %v2639_v32  ;;  %v2946_v50 = vunpack.i.h.bf16 %v2368_v7  ;;  %v1138_v7 = vsel %vm1117_vm5, %v2505_v16, %v1880_v37  ;;  %v289_v16 = vld [vmem:[%s2921_s4 + $0x10] sm:$0xff] }
 0x2ec   : > { %1218 = vmatpush.msra.mxu2 %v1130_v31  ;;  %1253 = vmatpush.msra.mxu3 %v1140_v23  ;;  %v1761_v23 = vunpack.i.h.bf16 %v2508_v19  ;;  %v1816_v31 = vunpack.i.h.bf16 %v2542_v45  ;;  %v2950_v37 = vunpack.i.l.bf16 %v2392_v43  ;;  %v1917_v45 = vpack.i.bf16 %v1765_v41, %v1760_v55 }
 0x2ed   : > { %1953 = vrot.lane.b32.xlu1 %v1952_v4, %s2009_s14  ;;  %1923 = vrot.lane.b32.xlu0 %v1922_v14, %s2009_s14  ;;  %v1139_v12 = vsel %vm1117_vm5, %v2946_v50, %v1815_v49  ;;  %v1886_v4 = vunpack.i.h.bf16 %v2594_v54  ;;  %v1127_v49 = vsel %vm1117_vm5, %v2948_v11, %v1841_v51  ;;  %v2949_v54 = vunpack.i.h.bf16 %v2461_v21 }
 0x2ee   : > { %1913 = vrot.lane.b32.xlu2 %v1912_v9, %s2009_s14  ;;  %1219 = vmatpush.msra.mxu2 %v1129_v22  ;;  %v1126_v9 = vsel %vm1117_vm5, %v2950_v37, %v1831_v61  ;;  %v1927_v51 = vpack.i.bf16 %v1766_v6, %v1761_v23  ;;  %v1881_v21 = vunpack.i.h.bf16 %v1879_v44  ;;  %v2952_v43 = vunpack.i.h.bf16 %v2360_v27 }
 0x2ef   : > { %1254 = vmatpush.msra.mxu3 %v1139_v12  ;;  %v1137_v14 = vsel %vm1117_vm5, %v2949_v54, %v1885_v30  ;;  %v1136_v22 = vsel %vm1117_vm5, %v2951_v62, %v1886_v4  ;;  %v1731_v50 = vunpack.i.h.bf16 %v2420_v59  ;;  %v1123_v27 = vsel %vm1117_vm5, %v2326_v46, %v2540_v56  ;;  %v272_v46 = vld [vmem:[%s2920_s3 + $0x8] sm:$0xff] }
 0x2f0   : > { %v2682_v33 = vpop.permute.xlu0 %900  ;;  %1220 = vmatpush.msra.mxu2 %v1128_v25  ;;  %v1125_v30 = vsel %vm1117_vm5, %v2952_v43, %v1816_v31  ;;  %v1124_v44 = vsel %vm1117_vm5, %v2364_v47, %v1881_v21  ;;  %v1870_v25 = vunpack.i.l.bf16 %v2592_v15  ;;  %v1122_v31 = vsel %vm1117_vm5, %v2318_v34, %v2569_v36  ;;  %v279_v21 = vld [vmem:[%s2920_s3 + $0x40] sm:$0xff]  ;;  %v284_v62 = vld [vmem:[%s2920_s3 + $0x68] sm:$0xff]  ;;  %v273_v15 = vld [vmem:[%s2920_s3 + $0x10] sm:$0xff] }
 0x2f1   : > { %1255 = vmatpush.msra.mxu3 %v1138_v7  ;;  %v2953_v7 = vunpack.i.l.bf16 %v2384_v39  ;;  %v1942_v47 = vpack.i.bf16 %v1731_v50, %v1726_v3  ;;  %v1121_v39 = vsel %vm1117_vm5, %v2298_v17, %v2525_v8  ;;  %v2954_v54 = vunpack.i.h.bf16 %v2390_v42  ;;  %v288_v42 = vld [vmem:[%s2921_s4 + $0x8] sm:$0xff] }
 0x2f2   : > { %1221 = vmatpush.msra.mxu2 %v1127_v49  ;;  %v1947_v49 = vpack.i.bf16 %v1870_v25, %v2682_v33  ;;  %v1119_v17 = vsel %vm1117_vm5, %v2271_v40, %v2634_v10  ;;  %v276_v40 = vld [vmem:[%s2920_s3 + $0x28] sm:$0xff] }
 0x2f3   : > { %1256 = vmatpush.msra.mxu3 %v1137_v14 }
 0x2f4   : > { %1222 = vmatpush.msra.mxu2 %v1126_v9  ;;  %v1118_v9 = vsel %vm1117_vm5, %v2264_v20, %v2639_v32  ;;  %v275_v20 = vld [vmem:[%s2920_s3 + $0x20] sm:$0xff] }
 0x2f5   : > { %1257 = vmatpush.msra.mxu3 %v1136_v22  ;;  %1191 = vperm.xlu1 %1680, %v289_v16   ;;  %v1120_v16 = vsel %vm1117_vm5, %v2290_v5, %v2549_v24  ;;  %v287_v5 = vld [vmem:[%s2921_s4] sm:$0xff] }
 0x2f6   : > { %1928 = vrot.lane.b32.xlu0 %v1927_v51, %s2009_s14  ;;  %1918 = vrot.lane.b32.xlu2 %v1917_v45, %s2009_s14  ;;  %v290_v51 = vld [vmem:[%s2921_s4 + $0x18] sm:$0xff]  ;;  %v280_v45 = vld [vmem:[%s2920_s3 + $0x48] sm:$0xff] }
 0x2f7   : > { %1223 = vmatpush.msra.mxu2 %v1125_v30  ;;  %v283_v22 = vld [vmem:[%s2920_s3 + $0x60] sm:$0xff] }
 0x2f8   : > { %v1874_v12 = vpop.permute.xlu0 %1873 }
 0x2f9   : > { %v1875_v61 = vunpack.i.l.bf16 %v1874_v12  ;;  %1224 = vmatpush.msra.mxu2 %v1124_v44  ;;  %v1876_v4 = vunpack.i.h.bf16 %v1874_v12 }
 0x2fb   : > { %1225 = vmatpush.msra.mxu2 %v1123_v27  ;;  %v1135_v11 = vsel %vm1117_vm5, %v2953_v7, %v1875_v61  ;;  %v1134_v14 = vsel %vm1117_vm5, %v2954_v54, %v1876_v4 }
 0x2fc   : > { %1258 = vmatpush.msra.mxu3 %v1135_v11 }
 0x2fd   : > { %1226 = vmatpush.msra.mxu2 %v1122_v31 }
 0x2fe   : > { %1948 = vrot.lane.b32.xlu0 %v1947_v49, %s2009_s14  ;;  %1943 = vrot.lane.b32.xlu2 %v1942_v47, %s2009_s14 }
 0x2ff   : > { %1227 = vmatpush.msra.mxu2 %v1121_v39  ;;  %1259 = vmatpush.msra.mxu3 %v1134_v14 }
 0x300   : > { %v1061_v34 = vpop.permute.xlu0 %1060  ;;  %1260 = vmatmul.f32.vlgmr.msra.gmra.mxu3 %v272_v46 }
 0x301   : > { %1228 = vmatpush.msra.mxu2 %v1120_v16  ;;  %v1178_v37 = vsel %vm1117_vm5, %v2518_v0, %v1061_v34  ;;  %v271_v0 = vld [vmem:[%s2920_s3] sm:$0xff] }
 0x302   : > { %1453 = vmatpush.msk.msrb.mxu3 %vm331_vm0, %v1178_v37 }
 0x303   : > { %1229 = vmatpush.msra.mxu2 %v1119_v17 }
 0x305   : > { %1230 = vmatpush.msra.mxu2 %v1118_v9 }
 0x306   : > { %1186 = vperm.xlu0 %1679, %v288_v42   ;;  %1181 = vperm.xlu2 %1681, %v287_v5   ;;  %v2956_v5 = vunpack.i.l.bf16 %v2409_v2 }
 0x307   : > { %1231 = vmatmul.f32.vlgmr.msra.gmra.mxu2 %v271_v0 }
 0x308   : > { %1263 = vmatmul.f32.gmra.mxu3 %v276_v40 }
 0x30e   : > { %1196 = vperm.xlu2 %1681, %v290_v51  }
 0x30f   : > { %1234 = vmatmul.f32.gmra.mxu2 %v275_v20 }
 0x310   : > { %1266 = vmatmul.f32.gmra.mxu3 %v280_v45 }
 0x316   : > { %v1899_v30 = vpop.permute.xlu0 %1898 }
 0x317   : > { %1237 = vmatmul.f32.gmra.mxu2 %v279_v21  ;;  %v1900_v11 = vunpack.i.l.bf16 %v1899_v30  ;;  %v1901_v14 = vunpack.i.h.bf16 %v1899_v30 }
 0x318   : > { %1269 = vmatmul.f32.gmra.mxu3 %v284_v62 }
 0x319   : > { %v1161_v9 = vsel %vm1117_vm5, %v2956_v5, %v1901_v14 }
 0x31f   : > { %1240 = vmatmul.f32.gmra.mxu2 %v283_v22 }
 0x337   : > { %v1894_v43 = vpop.permute.xlu2 %1893 }
 0x338   : > { %v1895_v44 = vunpack.i.l.bf16 %v1894_v43  ;;  %v1896_v39 = vunpack.i.h.bf16 %v1894_v43 }
 0x33a   : > { %v1176_v46 = vsel %vm1117_vm5, %v2569_v36, %v1895_v44 }
 0x33e   : > { %v1889_v12 = vpop.permute.xlu1 %1888 }
 0x33f   : > { %v1890_v61 = vunpack.i.l.bf16 %v1889_v12  ;;  %v1909_v4 = vpop.permute.xlu2 %1908  ;;  %v1891_v49 = vunpack.i.h.bf16 %v1889_v12  ;;  %v2958_v12 = vunpack.i.h.bf16 %v2531_v57 }
 0x340   : > { %v1911_v27 = vunpack.i.h.bf16 %v1909_v4  ;;  %v1910_v7 = vunpack.i.l.bf16 %v1909_v4 }
 0x341   : > { %v1177_v47 = vsel %vm1117_vm5, %v2540_v56, %v1890_v61  ;;  %v1175_v56 = vsel %vm1117_vm5, %v2525_v8, %v1900_v11 }
 0x342   : > { %v1165_v31 = vsel %vm1117_vm5, %v2601_v38, %v1910_v7  ;;  %1306 = vmatpush.msrb.mxu3 %v1177_v47  ;;  %v1164_v54 = vsel %vm1117_vm5, %v1791_v58, %v1911_v27  ;;  %v2955_v38 = vunpack.i.l.bf16 %v2493_v53  ;;  %v1162_v58 = vsel %vm1117_vm5, %v1756_v13, %v1896_v39 }
 0x343   : > { %1273 = vmatpush.msrb.mxu1 %v1165_v31  ;;  %1465 = vmatpush.msrb.mxu2 %v1165_v31  ;;  %v2957_v53 = vunpack.i.h.bf16 %v2409_v2 }
 0x344   : > { %1307 = vmatpush.msrb.mxu3 %v1176_v46  ;;  %v1163_v16 = vsel %vm1117_vm5, %v2955_v38, %v1891_v49  ;;  %v2960_v46 = vunpack.i.l.bf16 %v2375_v35  ;;  %v285_v38 = vld [vmem:[%s2920_s3 + $0x70] sm:$0xff] }
 0x345   : > { %1274 = vmatpush.msrb.mxu1 %v1164_v54  ;;  %1466 = vmatpush.msrb.mxu2 %v1164_v54 }
 0x346   : > { %v1904_v34 = vpop.permute.xlu1 %1903  ;;  %1308 = vmatpush.msrb.mxu3 %v1175_v56 }
 0x347   : > { %v1905_v37 = vunpack.i.l.bf16 %v1904_v34  ;;  %1275 = vmatpush.msrb.mxu1 %v1163_v16  ;;  %1467 = vmatpush.msrb.mxu2 %v1163_v16  ;;  %v1906_v36 = vunpack.i.h.bf16 %v1904_v34  ;;  %v286_v16 = vld [vmem:[%s2920_s3 + $0x78] sm:$0xff] }
 0x348   : > { %v1914_v63 = vpop.permute.xlu2 %1913 }
 0x349   : > { %v1915_v17 = vunpack.i.l.bf16 %v1914_v63  ;;  %1276 = vmatpush.msrb.mxu1 %v1162_v58  ;;  %1468 = vmatpush.msrb.mxu2 %v1162_v58  ;;  %v1174_v8 = vsel %vm1117_vm5, %v2549_v24, %v1905_v37  ;;  %v1916_v42 = vunpack.i.h.bf16 %v1914_v63  ;;  %v1160_v13 = vsel %vm1117_vm5, %v2957_v53, %v1906_v36 }
 0x34a   : > { %1309 = vmatpush.msrb.mxu3 %v1174_v8 }
 0x34b   : > { %1277 = vmatpush.msrb.mxu1 %v1161_v9  ;;  %1469 = vmatpush.msrb.mxu2 %v1161_v9  ;;  %v1173_v0 = vsel %vm1117_vm5, %v2634_v10, %v1915_v17  ;;  %v1159_v24 = vsel %vm1117_vm5, %v1695_v18, %v1916_v42 }
 0x34c   : > { %1310 = vmatpush.msrb.mxu3 %v1173_v0 }
 0x34d   : > { %1278 = vmatpush.msrb.mxu1 %v1160_v13  ;;  %1470 = vmatpush.msrb.mxu2 %v1160_v13 }
 0x34e   : > { %v1934_v40 = vpop.permute.xlu1 %1933 }
 0x34f   : > { %1279 = vmatpush.msrb.mxu1 %v1159_v24  ;;  %1471 = vmatpush.msrb.mxu2 %v1159_v24  ;;  %v1936_v45 = vunpack.i.h.bf16 %v1934_v40  ;;  %v1935_v10 = vunpack.i.l.bf16 %v1934_v40 }
 0x350   : > { %v1919_v51 = vpop.permute.xlu2 %1918 }
 0x351   : > { %v1921_v22 = vunpack.i.h.bf16 %v1919_v51  ;;  %v1920_v30 = vunpack.i.l.bf16 %v1919_v51  ;;  %v1157_v18 = vsel %vm1117_vm5, %v1801_v29, %v1936_v45  ;;  %v1171_v44 = vsel %vm1117_vm5, %v2958_v12, %v1935_v10 }
 0x356   : > { %v1939_v28 = vpop.permute.xlu1 %1938 }
 0x357   : > { %v1941_v29 = vunpack.i.h.bf16 %v1939_v28  ;;  %v1940_v57 = vunpack.i.l.bf16 %v1939_v28 }
 0x358   : > { %v1944_v52 = vpop.permute.xlu2 %1943 }
 0x359   : > { %v1946_v7 = vunpack.i.h.bf16 %v1944_v52  ;;  %v1945_v47 = vunpack.i.l.bf16 %v1944_v52  ;;  %v1168_v60 = vsel %vm1117_vm5, %v2960_v46, %v1940_v57 }
 0x35b   : > { %v1153_v19 = vsel %vm1117_vm5, %v1731_v50, %v1946_v7  ;;  %v274_v50 = vld [vmem:[%s2920_s3 + $0x18] sm:$0xff] }
 0x35f   : > { %v1924_v20 = vpop.permute.xlu0 %1923  ;;  %v1954_v31 = vpop.permute.xlu1 %1953 }
 0x360   : > { %v1926_v21 = vunpack.i.h.bf16 %v1924_v20  ;;  %v1925_v62 = vunpack.i.l.bf16 %v1924_v20  ;;  %v1955_v39 = vunpack.i.l.bf16 %v1954_v31  ;;  %v1956_v14 = vunpack.i.h.bf16 %v1954_v31  ;;  %v1182_v42 = vpop.permute.xlu2 %1181 }
 0x362   : > { %v1158_v2 = vsel %vm1117_vm5, %v2652_v26, %v1926_v21  ;;  %v1172_v43 = vsel %vm1117_vm5, %v2639_v32, %v1925_v62  ;;  %v1156_v32 = vsel %vm1117_vm5, %v1765_v41, %v1921_v22  ;;  %v1170_v26 = vsel %vm1117_vm5, %v1760_v55, %v1920_v30 }
 0x363   : > { %1280 = vmatpush.msrb.mxu1 %v1158_v2  ;;  %1472 = vmatpush.msrb.mxu2 %v1158_v2  ;;  %v2959_v55 = vunpack.i.l.bf16 %v2420_v59  ;;  %v1151_v35 = vsel %vm1117_vm5, %v2646_v1, %v1955_v39  ;;  %v278_v1 = vld [vmem:[%s2920_s3 + $0x38] sm:$0xff] }
 0x364   : > { %1311 = vmatpush.msrb.mxu3 %v1172_v43 }
 0x365   : > { %1281 = vmatpush.msrb.mxu1 %v1157_v18  ;;  %1473 = vmatpush.msrb.mxu2 %v1157_v18  ;;  %v1154_v49 = vsel %vm1117_vm5, %v2959_v55, %v1941_v29 }
 0x366   : > { %1312 = vmatpush.msrb.mxu3 %v1171_v44 }
 0x367   : > { %1282 = vmatpush.msrb.mxu1 %v1156_v32  ;;  %1474 = vmatpush.msrb.mxu2 %v1156_v32  ;;  %v1192_v2 = vpop.permute.xlu1 %1191 }
 0x368   : > { %v1929_v61 = vpop.permute.xlu0 %1928  ;;  %1313 = vmatpush.msrb.mxu3 %v1170_v26  ;;  %v1197_v26 = vpop.permute.xlu2 %1196 }
 0x369   : > { %v1931_v4 = vunpack.i.h.bf16 %v1929_v61  ;;  %v1930_v27 = vunpack.i.l.bf16 %v1929_v61 }
 0x36b   : > { %v1155_v11 = vsel %vm1117_vm5, %v1766_v6, %v1931_v4  ;;  %v1169_v41 = vsel %vm1117_vm5, %v1761_v23, %v1930_v27  ;;  %v1167_v6 = vsel %vm1117_vm5, %v1726_v3, %v1945_v47  ;;  %v277_v3 = vld [vmem:[%s2920_s3 + $0x30] sm:$0xff] }
 0x36c   : > { %1283 = vmatpush.msrb.mxu1 %v1155_v11  ;;  %1475 = vmatpush.msrb.mxu2 %v1155_v11 }
 0x36d   : > { %1314 = vmatpush.msrb.mxu3 %v1169_v41 }
 0x36e   : > { %1284 = vmatpush.msrb.mxu1 %v1154_v49  ;;  %1476 = vmatpush.msrb.mxu2 %v1154_v49 }
 0x36f   : > { %1315 = vmatpush.msrb.mxu3 %v1168_v60 }
 0x370   : > { %v1949_v23 = vpop.permute.xlu0 %1948  ;;  %1285 = vmatpush.msrb.mxu1 %v1153_v19  ;;  %1477 = vmatpush.msrb.mxu2 %v1153_v19 }
 0x371   : > { %v1951_v54 = vunpack.i.h.bf16 %v1949_v23  ;;  %v1950_v56 = vunpack.i.l.bf16 %v1949_v23  ;;  %1316 = vmatpush.msrb.mxu3 %v1167_v6 }
 0x373   : > { %v1152_v34 = vsel %vm1117_vm5, %v1870_v25, %v1951_v54  ;;  %v1166_v59 = vsel %vm1117_vm5, %v2682_v33, %v1950_v56  ;;  %v1150_v33 = vsel %vm1117_vm5, %v2636_v48, %v1956_v14  ;;  %v281_v25 = vld [vmem:[%s2920_s3 + $0x50] sm:$0xff]  ;;  %v282_v48 = vld [vmem:[%s2920_s3 + $0x58] sm:$0xff] }
 0x374   : > { %1286 = vmatpush.msrb.mxu1 %v1152_v34  ;;  %1478 = vmatpush.msrb.mxu2 %v1152_v34 }
 0x375   : > { %1317 = vmatpush.msrb.mxu3 %v1166_v59 }
 0x376   : > { %1454 = vmatmul.msk.f32.vlgmr.msrb.gmra.mxu3 %vm1199_vm6, %v274_v50  ;;  %1287 = vmatpush.msrb.mxu1 %v1151_v35 }
 0x377   : > { %1479 = vmatpush.msrb.mxu2 %v1151_v35 }
 0x378   : > { %1288 = vmatpush.msrb.mxu1 %v1150_v33  ;;  %v1187_v40 = vpop.permute.xlu0 %1186 }
 0x379   : > { %1480 = vmatpush.msrb.mxu2 %v1150_v33  ;;  %1289 = vmatmul.f32.vlgmr.msrb.gmra.mxu1 %v273_v15 }
 0x37a   : > { %1292 = vmatmul.f32.vlgmr.msrb.gmra.mxu2 %v277_v3 }
 0x37e   : > { %1455 = vmatmul.msk.f32.gmra.mxu3 %vm1199_vm6, %v278_v1 }
 0x382   : > { %1295 = vmatmul.f32.gmra.mxu2 %v281_v25 }
 0x383   : > { %v1261_v37 = vpop.f32.mrf.mxu3 }
 0x386   : > { %1456 = vmatmul.msk.f32.gmra.mxu3 %vm1199_vm6, %v282_v48 }
 0x38a   : > { %1298 = vmatmul.f32.gmra.mxu2 %v285_v38  ;;  %v1232_v36 = vpop.f32.mrf.mxu2 }
 0x38b   : > { %v1264_v63 = vpop.f32.mrf.mxu3  ;;  %v1233_v5 = vadd.f32 %v1232_v36, %v1182_v42 }
 0x38d   : > { %v1262_v0 = vadd.f32 %v1261_v37, %v1233_v5 }
 0x38e   : > { %1457 = vmatmul.msk.f32.gmra.mxu3 %vm1199_vm6, %v286_v16 }
 0x392   : > { %v1235_v58 = vpop.f32.mrf.mxu2 }
 0x393   : > { %v1267_v17 = vpop.f32.mrf.mxu3  ;;  %v1236_v20 = vadd.f32 %v1235_v58, %v1187_v40 }
 0x395   : > { %v1265_v10 = vadd.f32 %v1264_v63, %v1236_v20 }
 0x39a   : > { %v1238_v8 = vpop.f32.mrf.mxu2 }
 0x39b   : > { %v1270_v9 = vpop.f32.mrf.mxu3  ;;  %v1239_v30 = vadd.f32 %v1238_v8, %v1192_v2 }
 0x39d   : > { %v1268_v44 = vadd.f32 %v1267_v17, %v1239_v30 }
 0x3a2   : > { %v1241_v53 = vpop.f32.mrf.mxu2 }
 0x3a3   : > { %v1242_v61 = vadd.f32 %v1241_v53, %v1197_v26 }
 0x3a5   : > { %v1271_v57 = vadd.f32 %v1270_v9, %v1242_v61 }
 0x3f6   : > { %v1290_v13 = vpop.f32.mrf.mxu1 }
 0x3f7   : > { %v1291_v24 = vadd.f32 %v1290_v13, %v1262_v0 }
 0x3f9   : > { %v1319_v51 = vpop.f32.mrf.mxu3 }
 0x3fa   : > { %v1320_v45 = vadd.f32 %v1319_v51, %v1291_v24 }
 0x3fc   : > { %v1331_v21 = vmax.f32 %v1320_v45, 0.0 }
 0x3fd   : > { %v1293_v62 = vpop.f32.mrf.mxu2 }
 0x3fe   : > { %1335 = vst.msk [vmem:[%s2896_s29] sm:$0xff] %vm1117_vm5, %v1331_v21  ;;  %1343 = vrot.lane.b32.xlu0 %v1331_v21, %s2012_s30  ;;  %v1294_v22 = vadd.f32 %v1293_v62, %v1265_v10 }
 0x401   : > { %v1322_v43 = vpop.f32.mrf.mxu3 }
 0x402   : > { %v1323_v28 = vadd.f32 %v1322_v43, %v1294_v22 }
 0x404   : > { %v1332_v18 = vmax.f32 %v1323_v28, 0.0 }
 0x405   : > { %v1296_v12 = vpop.f32.mrf.mxu2 }
 0x406   : > { %1336 = vst.msk [vmem:[%s2896_s29 + $0x8] sm:$0xff] %vm1117_vm5, %v1332_v18  ;;  %1345 = vrot.lane.b32.xlu1 %v1332_v18, %s2012_s30  ;;  %v1297_v32 = vadd.f32 %v1296_v12, %v1268_v44 }
 0x409   : > { %v1325_v52 = vpop.f32.mrf.mxu3 }
 0x40a   : > { %v1326_v29 = vadd.f32 %v1325_v52, %v1297_v32 }
 0x40c   : > { %v1333_v4 = vmax.f32 %v1326_v29, 0.0 }
 0x40d   : > { %v1299_v27 = vpop.f32.mrf.mxu2 }
 0x40e   : > { %1337 = vst.msk [vmem:[%s2896_s29 + $0x10] sm:$0xff] %vm1117_vm5, %v1333_v4  ;;  %1347 = vrot.lane.b32.xlu2 %v1333_v4, %s2012_s30  ;;  %v1300_v7 = vadd.f32 %v1299_v27, %v1271_v57 }
 0x411   : > { %v1328_v11 = vpop.f32.mrf.mxu3 }
 0x412   : > { %v1329_v41 = vadd.f32 %v1328_v11, %v1300_v7 }
 0x414   : > { %v1334_v47 = vmax.f32 %v1329_v41, 0.0 }
 0x416   : > { %1338 = vst.msk [vmem:[%s2896_s29 + $0x18] sm:$0xff] %vm1117_vm5, %v1334_v47  ;;  %1349 = vrot.lane.b32.xlu0 %v1334_v47, %s2012_s30 }
 0x468   : > { %v1348_v55 = vpop.permute.xlu2 %1347 }
 0x469   : > { %1460 = vst.msk [vmem:[%s2896_s29 + $0x30] sm:$0xff] %vm1117_vm5, %v1348_v55 }
 0x470   : > { %v1344_v49 = vpop.permute.xlu0 %1343 }
 0x471   : > { %1458 = vst.msk [vmem:[%s2896_s29 + $0x20] sm:$0xff] %vm1117_vm5, %v1344_v49 }
 0x478   : > { %v1346_v31 = vpop.permute.xlu1 %1345 }
 0x479   : > { %1459 = vst.msk [vmem:[%s2896_s29 + $0x28] sm:$0xff] %vm1117_vm5, %v1346_v31 }
 0x488   : > { %v1350_v46 = vpop.permute.xlu0 %1349 }
 0x489   : > { %1461 = vst.msk [vmem:[%s2896_s29 + $0x38] sm:$0xff] %vm1117_vm5, %v1350_v46 }
 0x48a PF: > { %s16_s18 = sadd.s32 1, %s1997_s18  }
 0x48b   : > { %p13_p7 = scmp.ge.s32.totalorder %s16_s18, 4  }
 0x48d   :  { %15 = sbr.rel (!%p13_p7) target bundleno = 1 (0x1), region = 77 }
 0x492   :  { %1384 = vsyncpa [#allocation3], 1 }
 0x493   :  { %1386 = vsyncpa [#allocation3 + $0x1], 1 }

</bundles_post_ra>
